<compile_context>
chip_gen: v7x
topology: tpu7x:2x2x1
jax: 0.10.0
libtpu: 0.0.40
codegen_flags: <defaults>
</compile_context>

<pallas_src>
import jax
import jax.numpy as jnp
from jax import lax
from jax.experimental import pallas as pl
from jax.experimental.pallas import tpu as pltpu


# ---------------- small config consistent with VAE_TFM2.__init__ -------------
BATCH = 2
INPUT_SIZE = 16      # input_size
HIDDEN = 32          # hidden_size (divisible by num_heads)
NUM_HEADS = 4        # only affects divisibility; seq_len==1 collapses attention
FF = 64              # dim_feedforward
WORD_LEN = 4         # word_length
DICT = 8             # dictionary_size
NUM_LAYERS = 2       # num_layers (encoder and decoder stacks)
LN_EPS = 1e-5        # nn.LayerNorm default
LANES = 128          # lane-dense packing width
ROW_TILE = 8         # batch rows per grid step (one sublane tile)

# output slab layout (lanes)
OFF_RECON = 0
OFF_OH = OFF_RECON + INPUT_SIZE                 # 16
OFF_LOG = OFF_OH + WORD_LEN * DICT              # 48
OFF_MSG = OFF_LOG + WORD_LEN * DICT             # 80
OUT_USED = OFF_MSG + WORD_LEN                   # 84


def init_params(key):
    """Deterministic synthetic parameters; shapes follow VAE_TFM2.__init__
    (weights stored (in_features, out_features), i.e. y = x @ W + b).
    Biases / LN params are non-trivial so the host-side folds are exercised."""
    params = {}

    def add(name, shape, scale=0.08):
        nonlocal key
        key, sub = jax.random.split(key)
        params[name] = jax.random.normal(sub, shape, jnp.float32) * scale

    def add_ln(prefix):
        nonlocal key
        key, sub = jax.random.split(key)
        params[prefix + "_g"] = 1.0 + 0.05 * jax.random.normal(sub, (1, HIDDEN), jnp.float32)
        key, sub = jax.random.split(key)
        params[prefix + "_b"] = 0.05 * jax.random.normal(sub, (1, HIDDEN), jnp.float32)

    add("enc_embed_w", (INPUT_SIZE, HIDDEN)); add("enc_embed_b", (1, HIDDEN), 0.05)
    for i in range(NUM_LAYERS):
        add(f"enc{i}_wv", (HIDDEN, HIDDEN)); add(f"enc{i}_bv", (1, HIDDEN), 0.05)
        add(f"enc{i}_wo", (HIDDEN, HIDDEN)); add(f"enc{i}_bo", (1, HIDDEN), 0.05)
        add_ln(f"enc{i}_ln1")
        add(f"enc{i}_w1", (HIDDEN, FF)); add(f"enc{i}_b1", (1, FF), 0.05)
        add(f"enc{i}_w2", (FF, HIDDEN)); add(f"enc{i}_b2", (1, HIDDEN), 0.05)
        add_ln(f"enc{i}_ln2")
    add("lat_w", (HIDDEN, WORD_LEN * DICT)); add("lat_b", (1, WORD_LEN * DICT), 0.05)
    add("dec_embed_w", (WORD_LEN * DICT, HIDDEN)); add("dec_embed_b", (1, HIDDEN), 0.05)
    for i in range(NUM_LAYERS):
        add(f"dec{i}_sa_wv", (HIDDEN, HIDDEN)); add(f"dec{i}_sa_bv", (1, HIDDEN), 0.05)
        add(f"dec{i}_sa_wo", (HIDDEN, HIDDEN)); add(f"dec{i}_sa_bo", (1, HIDDEN), 0.05)
        add_ln(f"dec{i}_ln1")
        add(f"dec{i}_ca_wv", (HIDDEN, HIDDEN)); add(f"dec{i}_ca_bv", (1, HIDDEN), 0.05)
        add(f"dec{i}_ca_wo", (HIDDEN, HIDDEN)); add(f"dec{i}_ca_bo", (1, HIDDEN), 0.05)
        add_ln(f"dec{i}_ln2")
        add(f"dec{i}_w1", (HIDDEN, FF)); add(f"dec{i}_b1", (1, FF), 0.05)
        add(f"dec{i}_w2", (FF, HIDDEN)); add(f"dec{i}_b2", (1, HIDDEN), 0.05)
        add_ln(f"dec{i}_ln3")
    add("out_w", (HIDDEN, INPUT_SIZE)); add("out_b", (1, INPUT_SIZE), 0.05)
    return params


def fold_and_pack(p):
    """Fold seq_len==1 attention blocks and the two serial 'head' matmuls
    offline, then pack all parameters into one lane-dense (rows, 128) f32
    slab.  Returns (slab, offsets) with offsets[name] = (row, nrows, ncols)."""

    def fuse_attn(wv, bv, wo, bo):
        # out_proj(v_proj(x)) == x @ (Wv@Wo) + (bv@Wo + bo)
        return wv @ wo, bv @ wo + bo

    weights = []   # matrices; row counts are multiples of 8 -> tile-aligned
    vectors = []   # 1-row bias / LayerNorm parameters

    # encoder head fold: one (16, 64) matmul on x gives [h | attn0(h)]
    a0_w, a0_b = fuse_attn(p["enc0_wv"], p["enc0_bv"], p["enc0_wo"], p["enc0_bo"])
    enc_head_w = jnp.concatenate([p["enc_embed_w"], p["enc_embed_w"] @ a0_w], axis=1)
    enc_head_b = jnp.concatenate([p["enc_embed_b"], p["enc_embed_b"] @ a0_w + a0_b], axis=1)
    weights.append(("enc_head_w", enc_head_w))
    vectors.append(("enc_head_b", enc_head_b))

    for i in range(NUM_LAYERS):
        if i > 0:
            w, b = fuse_attn(p[f"enc{i}_wv"], p[f"enc{i}_bv"],
                             p[f"enc{i}_wo"], p[f"enc{i}_bo"])
            weights.append((f"enc{i}_attn_w", w))
            vectors.append((f"enc{i}_attn_b", b))
        weights += [(f"enc{i}_w1", p[f"enc{i}_w1"]), (f"enc{i}_w2", p[f"enc{i}_w2"])]
        vectors += [(f"enc{i}_ln1_g", p[f"enc{i}_ln1_g"]), (f"enc{i}_ln1_b", p[f"enc{i}_ln1_b"]),
                    (f"enc{i}_b1", p[f"enc{i}_b1"]), (f"enc{i}_b2", p[f"enc{i}_b2"]),
                    (f"enc{i}_ln2_g", p[f"enc{i}_ln2_g"]), (f"enc{i}_ln2_b", p[f"enc{i}_ln2_b"])]

    # latent + decoder-embedding fold: one (32, 64) matmul on h gives
    # [logits | pre-ReLU decoder embedding]
    lat_dec_w = jnp.concatenate([p["lat_w"], p["lat_w"] @ p["dec_embed_w"]], axis=1)
    lat_dec_b = jnp.concatenate(
        [p["lat_b"], p["lat_b"] @ p["dec_embed_w"] + p["dec_embed_b"]], axis=1)
    weights.append(("lat_dec_head_w", lat_dec_w))
    vectors.append(("lat_dec_head_b", lat_dec_b))

    ca_w, ca_b = [], []
    for i in range(NUM_LAYERS):
        sw, sb = fuse_attn(p[f"dec{i}_sa_wv"], p[f"dec{i}_sa_bv"],
                           p[f"dec{i}_sa_wo"], p[f"dec{i}_sa_bo"])
        cw, cb = fuse_attn(p[f"dec{i}_ca_wv"], p[f"dec{i}_ca_bv"],
                           p[f"dec{i}_ca_wo"], p[f"dec{i}_ca_bo"])
        ca_w.append(cw); ca_b.append(cb)
        weights += [(f"dec{i}_sa_w", sw), (f"dec{i}_w1", p[f"dec{i}_w1"]),
                    (f"dec{i}_w2", p[f"dec{i}_w2"])]
        vectors += [(f"dec{i}_sa_b", sb),
                    (f"dec{i}_ln1_g", p[f"dec{i}_ln1_g"]), (f"dec{i}_ln1_b", p[f"dec{i}_ln1_b"]),
                    (f"dec{i}_ln2_g", p[f"dec{i}_ln2_g"]), (f"dec{i}_ln2_b", p[f"dec{i}_ln2_b"]),
                    (f"dec{i}_b1", p[f"dec{i}_b1"]), (f"dec{i}_b2", p[f"dec{i}_b2"]),
                    (f"dec{i}_ln3_g", p[f"dec{i}_ln3_g"]), (f"dec{i}_ln3_b", p[f"dec{i}_ln3_b"])]
    # loop-invariant cross-attention: one (32, 64) weight for both layers
    weights.append(("dec_ca_cat_w", jnp.concatenate(ca_w, axis=1)))
    vectors.append(("dec_ca_cat_b", jnp.concatenate(ca_b, axis=1)))
    weights.append(("out_w", p["out_w"]))
    vectors.append(("out_b", p["out_b"]))

    offsets, blocks, row = {}, [], 0
    for name, arr in weights + vectors:
        r, c = arr.shape
        offsets[name] = (row, r, c)
        blocks.append(jnp.zeros((r, LANES), jnp.float32).at[:, :c].set(arr))
        row += r
    pad_rows = (-row) % ROW_TILE
    if pad_rows:
        blocks.append(jnp.zeros((pad_rows, LANES), jnp.float32))
    slab = jnp.concatenate(blocks, axis=0)
    return slab, offsets


def make_kernel(offsets, rows):
    def kernel(x_ref, p_ref, out_ref):
        # ---- point-of-use parameter access (static slices of the one slab) ----
        def mat(name):
            r, n, c = offsets[name]
            return p_ref[r:r + n, :c]

        def vec(name):
            r, _, c = offsets[name]
            return p_ref[r:r + 1, :c]          # (1, c) -> broadcasts over rows

        def linear(v, wname, bname):
            return jnp.dot(v, mat(wname), preferred_element_type=jnp.float32) + vec(bname)

        def layernorm(v, gname, bname):
            # single-pass: sum(v) and sum(v*v) are independent XLU reductions
            mu = jnp.mean(v, axis=-1, keepdims=True)
            ex2 = jnp.mean(v * v, axis=-1, keepdims=True)
            var = ex2 - mu * mu
            return (v - mu) * lax.rsqrt(var + LN_EPS) * vec(gname) + vec(bname)

        def relu(v):
            return jnp.maximum(v, 0.0)

        x = x_ref[...]                                          # (R, INPUT_SIZE)

        # ------------------------------ encode ------------------------------
        # one matmul on x -> [h | self-attn(h) of layer 0]
        hcat = linear(x, "enc_head_w", "enc_head_b")            # (R, 2H)
        h = layernorm(hcat[:, :HIDDEN] + hcat[:, HIDDEN:2 * HIDDEN],
                      "enc0_ln1_g", "enc0_ln1_b")
        for i in range(NUM_LAYERS):
            if i > 0:
                attn = linear(h, f"enc{i}_attn_w", f"enc{i}_attn_b")
                h = layernorm(h + attn, f"enc{i}_ln1_g", f"enc{i}_ln1_b")
            ff = linear(relu(linear(h, f"enc{i}_w1", f"enc{i}_b1")),
                        f"enc{i}_w2", f"enc{i}_b2")
            h = layernorm(h + ff, f"enc{i}_ln2_g", f"enc{i}_ln2_b")

        # one matmul on h -> [logits | pre-ReLU decoder embedding]
        lcat = linear(h, "lat_dec_head_w", "lat_dec_head_b")    # (R, 2*WL*DICT)
        logits = lcat[:, :WORD_LEN * DICT]                      # (R, 32)
        le = relu(lcat[:, WORD_LEN * DICT:2 * WORD_LEN * DICT]) # (R, H)

        # ------------------------------ decode ------------------------------
        # cross-attention is loop-invariant (memory == le, seq_len==1): one
        # wider matmul for both layers, off the critical path of y.
        ca_both = linear(le, "dec_ca_cat_w", "dec_ca_cat_b")    # (R, 2H)
        y = le
        for i in range(NUM_LAYERS):
            sa = linear(y, f"dec{i}_sa_w", f"dec{i}_sa_b")
            y = layernorm(y + sa, f"dec{i}_ln1_g", f"dec{i}_ln1_b")
            y = layernorm(y + ca_both[:, i * HIDDEN:(i + 1) * HIDDEN],
                          f"dec{i}_ln2_g", f"dec{i}_ln2_b")
            ff = linear(relu(linear(y, f"dec{i}_w1", f"dec{i}_b1")),
                        f"dec{i}_w2", f"dec{i}_b2")
            y = layernorm(y + ff, f"dec{i}_ln3_g", f"dec{i}_ln3_b")

        recon = linear(y, "out_w", "out_b")                     # (R, INPUT_SIZE)

        # -------- epilogue: direct sub-slice stores into the (R,128) slab ----
        out_ref[:, OFF_RECON:OFF_RECON + INPUT_SIZE] = recon
        out_ref[:, OFF_LOG:OFF_LOG + WORD_LEN * DICT] = logits

        # eval-mode discretize: argmax per word directly on raw logits
        # (softmax is monotone -> same argmax); straight-through forward value
        # is exactly the one-hot in eval mode.  iota hoisted out of the loop.
        iota = lax.broadcasted_iota(jnp.int32, (rows, DICT), 1)
        for w in range(WORD_LEN):
            lg = logits[:, w * DICT:(w + 1) * DICT]             # (R, DICT)
            maxv = jnp.max(lg, axis=-1, keepdims=True)
            idx = jnp.min(jnp.where(lg == maxv, iota, DICT), axis=-1,
                          keepdims=True)                        # first argmax (R,1)
            out_ref[:, OFF_OH + w * DICT:OFF_OH + (w + 1) * DICT] = \
                (iota == idx).astype(jnp.float32)
            out_ref[:, OFF_MSG + w:OFF_MSG + w + 1] = idx.astype(jnp.float32)

        out_ref[:, OUT_USED:LANES] = jnp.zeros((rows, LANES - OUT_USED), jnp.float32)

    return kernel


def vae_tfm2_forward(x, slab, offsets):
    B = x.shape[0]
    b_pad = pl.cdiv(B, ROW_TILE) * ROW_TILE
    if b_pad != B:
        x = jnp.concatenate([x, jnp.zeros((b_pad - B, INPUT_SIZE), x.dtype)], axis=0)
    slab_rows = slab.shape[0]

    out = pl.pallas_call(
        make_kernel(offsets, ROW_TILE),
        out_shape=jax.ShapeDtypeStruct((b_pad, LANES), jnp.float32),
        grid=(b_pad // ROW_TILE,),
        in_specs=[pl.BlockSpec((ROW_TILE, INPUT_SIZE), lambda i: (i, 0)),
                  # constant index_map -> weight slab stays VMEM-resident
                  pl.BlockSpec((slab_rows, LANES), lambda i: (0, 0))],
        out_specs=pl.BlockSpec((ROW_TILE, LANES), lambda i: (i, 0)),
        compiler_params=pltpu.CompilerParams(
            dimension_semantics=("parallel",)),
    )(x, slab)

    out = out[:B]
    recon = out[:, OFF_RECON:OFF_RECON + INPUT_SIZE]
    one_hot = out[:, OFF_OH:OFF_OH + WORD_LEN * DICT].reshape(B, WORD_LEN, DICT)
    logits = out[:, OFF_LOG:OFF_LOG + WORD_LEN * DICT].reshape(B, WORD_LEN, DICT)
    msg = out[:, OFF_MSG:OFF_MSG + WORD_LEN].astype(jnp.int32)
    return recon, one_hot, logits, msg


def reference_forward(x, p):
    """Pure-JAX eval-mode reference with UNFUSED parameters (PyTorch semantics,
    seq_len == 1 so attention == out_proj(v_proj(memory)))."""
    def linear(v, w, b): return v @ w + b

    def ln(v, g, b):
        mu = jnp.mean(v, -1, keepdims=True)
        var = jnp.mean((v - mu) ** 2, -1, keepdims=True)
        return (v - mu) / jnp.sqrt(var + LN_EPS) * g + b

    def attn(mem, wv, bv, wo, bo):
        return linear(linear(mem, wv, bv), wo, bo)

    h = linear(x, p["enc_embed_w"], p["enc_embed_b"])
    for i in range(NUM_LAYERS):
        h = ln(h + attn(h, p[f"enc{i}_wv"], p[f"enc{i}_bv"],
                        p[f"enc{i}_wo"], p[f"enc{i}_bo"]),
               p[f"enc{i}_ln1_g"], p[f"enc{i}_ln1_b"])
        ff = linear(jax.nn.relu(linear(h, p[f"enc{i}_w1"], p[f"enc{i}_b1"])),
                    p[f"enc{i}_w2"], p[f"enc{i}_b2"])
        h = ln(h + ff, p[f"enc{i}_ln2_g"], p[f"enc{i}_ln2_b"])
    logits = linear(h, p["lat_w"], p["lat_b"])
    logits3 = logits.reshape(-1, WORD_LEN, DICT)
    soft = jax.nn.softmax(logits3, -1)
    msg = jnp.argmax(soft, -1)
    one_hot = jax.nn.one_hot(msg, DICT, dtype=jnp.float32)
    le = jax.nn.relu(linear(logits, p["dec_embed_w"], p["dec_embed_b"]))
    y = le
    for i in range(NUM_LAYERS):
        y = ln(y + attn(y, p[f"dec{i}_sa_wv"], p[f"dec{i}_sa_bv"],
                        p[f"dec{i}_sa_wo"], p[f"dec{i}_sa_bo"]),
               p[f"dec{i}_ln1_g"], p[f"dec{i}_ln1_b"])
        y = ln(y + attn(le, p[f"dec{i}_ca_wv"], p[f"dec{i}_ca_bv"],
                        p[f"dec{i}_ca_wo"], p[f"dec{i}_ca_bo"]),
               p[f"dec{i}_ln2_g"], p[f"dec{i}_ln2_b"])
        ff = linear(jax.nn.relu(linear(y, p[f"dec{i}_w1"], p[f"dec{i}_b1"])),
                    p[f"dec{i}_w2"], p[f"dec{i}_b2"])
        y = ln(y + ff, p[f"dec{i}_ln3_g"], p[f"dec{i}_ln3_b"])
    recon = linear(y, p["out_w"], p["out_b"])
    return recon, one_hot, logits3, msg


if __name__ == "__main__":
    key = jax.random.PRNGKey(0)
    pkey, xkey = jax.random.split(key)
    raw_params = init_params(pkey)
    slab, offsets = fold_and_pack(raw_params)
    x = jax.random.normal(xkey, (BATCH, INPUT_SIZE), jnp.float32)

    recon, one_hot, logits, msg = vae_tfm2_forward(x, slab, offsets)
    jax.block_until_ready((recon, one_hot, logits, msg))

    # structural sanity checks
    assert recon.shape == (BATCH, INPUT_SIZE)
    assert one_hot.shape == (BATCH, WORD_LEN, DICT)
    assert logits.shape == (BATCH, WORD_LEN, DICT)
    assert msg.shape == (BATCH, WORD_LEN)
    assert bool(jnp.all(jnp.isfinite(recon)))
    assert bool(jnp.allclose(one_hot.sum(-1), 1.0, atol=1e-6))
    assert bool(jnp.all(msg == jnp.argmax(logits, axis=-1)))
    assert bool(jnp.all(jnp.take_along_axis(one_hot, msg[..., None], axis=-1) == 1.0))

    # numeric check against the unfused pure-JAX eval-mode reference
    r_recon, r_oh, r_logits, r_msg = reference_forward(x, raw_params)
    assert bool(jnp.allclose(logits, r_logits, atol=2e-3))
    assert bool(jnp.allclose(recon, r_recon, atol=2e-3))
    assert bool(jnp.array_equal(msg, r_msg.astype(jnp.int32)))
    assert bool(jnp.array_equal(one_hot, r_oh))

    print("KERNEL_OK")
</pallas_src>

<mosaic_0001>
module attributes {stable_mosaic.version = 11 : i64} {
  func.func @kernel(%arg0: i32, %arg1: memref<8x16xf32, #tpu.memory_space<vmem>>, %arg2: memref<632x128xf32, #tpu.memory_space<vmem>>, %arg3: memref<8x128xf32, #tpu.memory_space<vmem>>) attributes {dimension_semantics = [#tpu.dimension_semantics<parallel>], iteration_bounds = array<i64: 1>, scalar_prefetch = 0 : i64, scratch_operands = 0 : i64, tpu.core_type = #tpu.core_type<tc>, window_params = [{transform_indices = @transform_0, window_bounds = array<i64: 8, 16>}, {pipeline_mode = #tpu.pipeline_mode<synchronous>, transform_indices = @transform_1, window_bounds = array<i64: 632, 128>}, {transform_indices = @transform_2, window_bounds = array<i64: 8, 128>}]} {
    %c0 = arith.constant 0 : index
    %c0_0 = arith.constant 0 : index
    %0 = vector.load %arg1[%c0, %c0_0] : memref<8x16xf32, #tpu.memory_space<vmem>>, vector<8x16xf32>
    %c0_1 = arith.constant 0 : index
    %c0_2 = arith.constant 0 : index
    %1 = vector.load %arg2[%c0_1, %c0_2] : memref<632x128xf32, #tpu.memory_space<vmem>>, vector<16x64xf32>
    %cst = arith.constant dense<0.000000e+00> : vector<8x64xf32>
    %2 = tpu.matmul %0, %1, %cst {dimension_numbers = #tpu.dot_dimension_numbers<[1], [0], [0], [1], [0, 0, 1, 1], [], []>} : vector<8x16xf32>, vector<16x64xf32>, vector<8x64xf32> -> vector<8x64xf32>
    %c592 = arith.constant 592 : index
    %c0_3 = arith.constant 0 : index
    %3 = vector.load %arg2[%c592, %c0_3] : memref<632x128xf32, #tpu.memory_space<vmem>>, vector<1x64xf32>
    %4 = vector.broadcast %3 : vector<1x64xf32> to vector<8x64xf32>
    %5 = arith.addf %2, %4 : vector<8x64xf32>
    %6 = vector.extract_strided_slice %5 {offsets = [0, 0], sizes = [8, 32], strides = [1, 1]} : vector<8x64xf32> to vector<8x32xf32>
    %7 = vector.extract_strided_slice %5 {offsets = [0, 32], sizes = [8, 32], strides = [1, 1]} : vector<8x64xf32> to vector<8x32xf32>
    %8 = arith.addf %6, %7 : vector<8x32xf32>
    %cst_4 = arith.constant dense<0.000000e+00> : vector<8xf32>
    %9 = vector.multi_reduction <add>, %8, %cst_4 [1] : vector<8x32xf32> to vector<8xf32>
    %10 = vector.shape_cast %9 : vector<8xf32> to vector<8x1xf32>
    %cst_5 = arith.constant 3.200000e+01 : f32
    %11 = vector.broadcast %cst_5 : f32 to vector<8x1xf32>
    %12 = arith.divf %10, %11 : vector<8x1xf32>
    %13 = arith.mulf %8, %8 : vector<8x32xf32>
    %cst_6 = arith.constant dense<0.000000e+00> : vector<8xf32>
    %14 = vector.multi_reduction <add>, %13, %cst_6 [1] : vector<8x32xf32> to vector<8xf32>
    %15 = vector.shape_cast %14 : vector<8xf32> to vector<8x1xf32>
    %cst_7 = arith.constant 3.200000e+01 : f32
    %16 = vector.broadcast %cst_7 : f32 to vector<8x1xf32>
    %17 = arith.divf %15, %16 : vector<8x1xf32>
    %18 = arith.mulf %12, %12 : vector<8x1xf32>
    %19 = arith.subf %17, %18 : vector<8x1xf32>
    %20 = vector.broadcast %12 : vector<8x1xf32> to vector<8x32xf32>
    %21 = arith.subf %8, %20 : vector<8x32xf32>
    %cst_8 = arith.constant 9.99999974E-6 : f32
    %22 = vector.broadcast %cst_8 : f32 to vector<8x1xf32>
    %23 = arith.addf %19, %22 : vector<8x1xf32>
    %24 = math.rsqrt %23 : vector<8x1xf32>
    %25 = vector.broadcast %24 : vector<8x1xf32> to vector<8x32xf32>
    %26 = arith.mulf %21, %25 : vector<8x32xf32>
    %c593 = arith.constant 593 : index
    %c0_9 = arith.constant 0 : index
    %27 = vector.load %arg2[%c593, %c0_9] : memref<632x128xf32, #tpu.memory_space<vmem>>, vector<1x32xf32>
    %28 = vector.broadcast %27 : vector<1x32xf32> to vector<8x32xf32>
    %29 = arith.mulf %26, %28 : vector<8x32xf32>
    %c594 = arith.constant 594 : index
    %c0_10 = arith.constant 0 : index
    %30 = vector.load %arg2[%c594, %c0_10] : memref<632x128xf32, #tpu.memory_space<vmem>>, vector<1x32xf32>
    %31 = vector.broadcast %30 : vector<1x32xf32> to vector<8x32xf32>
    %32 = arith.addf %29, %31 : vector<8x32xf32>
    %c16 = arith.constant 16 : index
    %c0_11 = arith.constant 0 : index
    %33 = vector.load %arg2[%c16, %c0_11] : memref<632x128xf32, #tpu.memory_space<vmem>>, vector<32x64xf32>
    %cst_12 = arith.constant dense<0.000000e+00> : vector<8x64xf32>
    %34 = tpu.matmul %32, %33, %cst_12 {dimension_numbers = #tpu.dot_dimension_numbers<[1], [0], [0], [1], [0, 0, 1, 1], [], []>} : vector<8x32xf32>, vector<32x64xf32>, vector<8x64xf32> -> vector<8x64xf32>
    %c595 = arith.constant 595 : index
    %c0_13 = arith.constant 0 : index
    %35 = vector.load %arg2[%c595, %c0_13] : memref<632x128xf32, #tpu.memory_space<vmem>>, vector<1x64xf32>
    %36 = vector.broadcast %35 : vector<1x64xf32> to vector<8x64xf32>
    %37 = arith.addf %34, %36 : vector<8x64xf32>
    %cst_14 = arith.constant 0.000000e+00 : f32
    %38 = vector.broadcast %cst_14 : f32 to vector<8x64xf32>
    %39 = arith.maximumf %37, %38 : vector<8x64xf32>
    %c48 = arith.constant 48 : index
    %c0_15 = arith.constant 0 : index
    %40 = vector.load %arg2[%c48, %c0_15] : memref<632x128xf32, #tpu.memory_space<vmem>>, vector<64x32xf32>
    %cst_16 = arith.constant dense<0.000000e+00> : vector<8x32xf32>
    %41 = tpu.matmul %39, %40, %cst_16 {dimension_numbers = #tpu.dot_dimension_numbers<[1], [0], [0], [1], [0, 0, 1, 1], [], []>} : vector<8x64xf32>, vector<64x32xf32>, vector<8x32xf32> -> vector<8x32xf32>
    %c596 = arith.constant 596 : index
    %c0_17 = arith.constant 0 : index
    %42 = vector.load %arg2[%c596, %c0_17] : memref<632x128xf32, #tpu.memory_space<vmem>>, vector<1x32xf32>
    %43 = vector.broadcast %42 : vector<1x32xf32> to vector<8x32xf32>
    %44 = arith.addf %41, %43 : vector<8x32xf32>
    %45 = arith.addf %32, %44 : vector<8x32xf32>
    %cst_18 = arith.constant dense<0.000000e+00> : vector<8xf32>
    %46 = vector.multi_reduction <add>, %45, %cst_18 [1] : vector<8x32xf32> to vector<8xf32>
    %47 = vector.shape_cast %46 : vector<8xf32> to vector<8x1xf32>
    %cst_19 = arith.constant 3.200000e+01 : f32
    %48 = vector.broadcast %cst_19 : f32 to vector<8x1xf32>
    %49 = arith.divf %47, %48 : vector<8x1xf32>
    %50 = arith.mulf %45, %45 : vector<8x32xf32>
    %cst_20 = arith.constant dense<0.000000e+00> : vector<8xf32>
    %51 = vector.multi_reduction <add>, %50, %cst_20 [1] : vector<8x32xf32> to vector<8xf32>
    %52 = vector.shape_cast %51 : vector<8xf32> to vector<8x1xf32>
    %cst_21 = arith.constant 3.200000e+01 : f32
    %53 = vector.broadcast %cst_21 : f32 to vector<8x1xf32>
    %54 = arith.divf %52, %53 : vector<8x1xf32>
    %55 = arith.mulf %49, %49 : vector<8x1xf32>
    %56 = arith.subf %54, %55 : vector<8x1xf32>
    %57 = vector.broadcast %49 : vector<8x1xf32> to vector<8x32xf32>
    %58 = arith.subf %45, %57 : vector<8x32xf32>
    %cst_22 = arith.constant 9.99999974E-6 : f32
    %59 = vector.broadcast %cst_22 : f32 to vector<8x1xf32>
    %60 = arith.addf %56, %59 : vector<8x1xf32>
    %61 = math.rsqrt %60 : vector<8x1xf32>
    %62 = vector.broadcast %61 : vector<8x1xf32> to vector<8x32xf32>
    %63 = arith.mulf %58, %62 : vector<8x32xf32>
    %c597 = arith.constant 597 : index
    %c0_23 = arith.constant 0 : index
    %64 = vector.load %arg2[%c597, %c0_23] : memref<632x128xf32, #tpu.memory_space<vmem>>, vector<1x32xf32>
    %65 = vector.broadcast %64 : vector<1x32xf32> to vector<8x32xf32>
    %66 = arith.mulf %63, %65 : vector<8x32xf32>
    %c598 = arith.constant 598 : index
    %c0_24 = arith.constant 0 : index
    %67 = vector.load %arg2[%c598, %c0_24] : memref<632x128xf32, #tpu.memory_space<vmem>>, vector<1x32xf32>
    %68 = vector.broadcast %67 : vector<1x32xf32> to vector<8x32xf32>
    %69 = arith.addf %66, %68 : vector<8x32xf32>
    %c112 = arith.constant 112 : index
    %c0_25 = arith.constant 0 : index
    %70 = vector.load %arg2[%c112, %c0_25] : memref<632x128xf32, #tpu.memory_space<vmem>>, vector<32x32xf32>
    %cst_26 = arith.constant dense<0.000000e+00> : vector<8x32xf32>
    %71 = tpu.matmul %69, %70, %cst_26 {dimension_numbers = #tpu.dot_dimension_numbers<[1], [0], [0], [1], [0, 0, 1, 1], [], []>} : vector<8x32xf32>, vector<32x32xf32>, vector<8x32xf32> -> vector<8x32xf32>
    %c599 = arith.constant 599 : index
    %c0_27 = arith.constant 0 : index
    %72 = vector.load %arg2[%c599, %c0_27] : memref<632x128xf32, #tpu.memory_space<vmem>>, vector<1x32xf32>
    %73 = vector.broadcast %72 : vector<1x32xf32> to vector<8x32xf32>
    %74 = arith.addf %71, %73 : vector<8x32xf32>
    %75 = arith.addf %69, %74 : vector<8x32xf32>
    %cst_28 = arith.constant dense<0.000000e+00> : vector<8xf32>
    %76 = vector.multi_reduction <add>, %75, %cst_28 [1] : vector<8x32xf32> to vector<8xf32>
    %77 = vector.shape_cast %76 : vector<8xf32> to vector<8x1xf32>
    %cst_29 = arith.constant 3.200000e+01 : f32
    %78 = vector.broadcast %cst_29 : f32 to vector<8x1xf32>
    %79 = arith.divf %77, %78 : vector<8x1xf32>
    %80 = arith.mulf %75, %75 : vector<8x32xf32>
    %cst_30 = arith.constant dense<0.000000e+00> : vector<8xf32>
    %81 = vector.multi_reduction <add>, %80, %cst_30 [1] : vector<8x32xf32> to vector<8xf32>
    %82 = vector.shape_cast %81 : vector<8xf32> to vector<8x1xf32>
    %cst_31 = arith.constant 3.200000e+01 : f32
    %83 = vector.broadcast %cst_31 : f32 to vector<8x1xf32>
    %84 = arith.divf %82, %83 : vector<8x1xf32>
    %85 = arith.mulf %79, %79 : vector<8x1xf32>
    %86 = arith.subf %84, %85 : vector<8x1xf32>
    %87 = vector.broadcast %79 : vector<8x1xf32> to vector<8x32xf32>
    %88 = arith.subf %75, %87 : vector<8x32xf32>
    %cst_32 = arith.constant 9.99999974E-6 : f32
    %89 = vector.broadcast %cst_32 : f32 to vector<8x1xf32>
    %90 = arith.addf %86, %89 : vector<8x1xf32>
    %91 = math.rsqrt %90 : vector<8x1xf32>
    %92 = vector.broadcast %91 : vector<8x1xf32> to vector<8x32xf32>
    %93 = arith.mulf %88, %92 : vector<8x32xf32>
    %c600 = arith.constant 600 : index
    %c0_33 = arith.constant 0 : index
    %94 = vector.load %arg2[%c600, %c0_33] : memref<632x128xf32, #tpu.memory_space<vmem>>, vector<1x32xf32>
    %95 = vector.broadcast %94 : vector<1x32xf32> to vector<8x32xf32>
    %96 = arith.mulf %93, %95 : vector<8x32xf32>
    %c601 = arith.constant 601 : index
    %c0_34 = arith.constant 0 : index
    %97 = vector.load %arg2[%c601, %c0_34] : memref<632x128xf32, #tpu.memory_space<vmem>>, vector<1x32xf32>
    %98 = vector.broadcast %97 : vector<1x32xf32> to vector<8x32xf32>
    %99 = arith.addf %96, %98 : vector<8x32xf32>
    %c144 = arith.constant 144 : index
    %c0_35 = arith.constant 0 : index
    %100 = vector.load %arg2[%c144, %c0_35] : memref<632x128xf32, #tpu.memory_space<vmem>>, vector<32x64xf32>
    %cst_36 = arith.constant dense<0.000000e+00> : vector<8x64xf32>
    %101 = tpu.matmul %99, %100, %cst_36 {dimension_numbers = #tpu.dot_dimension_numbers<[1], [0], [0], [1], [0, 0, 1, 1], [], []>} : vector<8x32xf32>, vector<32x64xf32>, vector<8x64xf32> -> vector<8x64xf32>
    %c602 = arith.constant 602 : index
    %c0_37 = arith.constant 0 : index
    %102 = vector.load %arg2[%c602, %c0_37] : memref<632x128xf32, #tpu.memory_space<vmem>>, vector<1x64xf32>
    %103 = vector.broadcast %102 : vector<1x64xf32> to vector<8x64xf32>
    %104 = arith.addf %101, %103 : vector<8x64xf32>
    %cst_38 = arith.constant 0.000000e+00 : f32
    %105 = vector.broadcast %cst_38 : f32 to vector<8x64xf32>
    %106 = arith.maximumf %104, %105 : vector<8x64xf32>
    %c176 = arith.constant 176 : index
    %c0_39 = arith.constant 0 : index
    %107 = vector.load %arg2[%c176, %c0_39] : memref<632x128xf32, #tpu.memory_space<vmem>>, vector<64x32xf32>
    %cst_40 = arith.constant dense<0.000000e+00> : vector<8x32xf32>
    %108 = tpu.matmul %106, %107, %cst_40 {dimension_numbers = #tpu.dot_dimension_numbers<[1], [0], [0], [1], [0, 0, 1, 1], [], []>} : vector<8x64xf32>, vector<64x32xf32>, vector<8x32xf32> -> vector<8x32xf32>
    %c603 = arith.constant 603 : index
    %c0_41 = arith.constant 0 : index
    %109 = vector.load %arg2[%c603, %c0_41] : memref<632x128xf32, #tpu.memory_space<vmem>>, vector<1x32xf32>
    %110 = vector.broadcast %109 : vector<1x32xf32> to vector<8x32xf32>
    %111 = arith.addf %108, %110 : vector<8x32xf32>
    %112 = arith.addf %99, %111 : vector<8x32xf32>
    %cst_42 = arith.constant dense<0.000000e+00> : vector<8xf32>
    %113 = vector.multi_reduction <add>, %112, %cst_42 [1] : vector<8x32xf32> to vector<8xf32>
    %114 = vector.shape_cast %113 : vector<8xf32> to vector<8x1xf32>
    %cst_43 = arith.constant 3.200000e+01 : f32
    %115 = vector.broadcast %cst_43 : f32 to vector<8x1xf32>
    %116 = arith.divf %114, %115 : vector<8x1xf32>
    %117 = arith.mulf %112, %112 : vector<8x32xf32>
    %cst_44 = arith.constant dense<0.000000e+00> : vector<8xf32>
    %118 = vector.multi_reduction <add>, %117, %cst_44 [1] : vector<8x32xf32> to vector<8xf32>
    %119 = vector.shape_cast %118 : vector<8xf32> to vector<8x1xf32>
    %cst_45 = arith.constant 3.200000e+01 : f32
    %120 = vector.broadcast %cst_45 : f32 to vector<8x1xf32>
    %121 = arith.divf %119, %120 : vector<8x1xf32>
    %122 = arith.mulf %116, %116 : vector<8x1xf32>
    %123 = arith.subf %121, %122 : vector<8x1xf32>
    %124 = vector.broadcast %116 : vector<8x1xf32> to vector<8x32xf32>
    %125 = arith.subf %112, %124 : vector<8x32xf32>
    %cst_46 = arith.constant 9.99999974E-6 : f32
    %126 = vector.broadcast %cst_46 : f32 to vector<8x1xf32>
    %127 = arith.addf %123, %126 : vector<8x1xf32>
    %128 = math.rsqrt %127 : vector<8x1xf32>
    %129 = vector.broadcast %128 : vector<8x1xf32> to vector<8x32xf32>
    %130 = arith.mulf %125, %129 : vector<8x32xf32>
    %c604 = arith.constant 604 : index
    %c0_47 = arith.constant 0 : index
    %131 = vector.load %arg2[%c604, %c0_47] : memref<632x128xf32, #tpu.memory_space<vmem>>, vector<1x32xf32>
    %132 = vector.broadcast %131 : vector<1x32xf32> to vector<8x32xf32>
    %133 = arith.mulf %130, %132 : vector<8x32xf32>
    %c605 = arith.constant 605 : index
    %c0_48 = arith.constant 0 : index
    %134 = vector.load %arg2[%c605, %c0_48] : memref<632x128xf32, #tpu.memory_space<vmem>>, vector<1x32xf32>
    %135 = vector.broadcast %134 : vector<1x32xf32> to vector<8x32xf32>
    %136 = arith.addf %133, %135 : vector<8x32xf32>
    %c240 = arith.constant 240 : index
    %c0_49 = arith.constant 0 : index
    %137 = vector.load %arg2[%c240, %c0_49] : memref<632x128xf32, #tpu.memory_space<vmem>>, vector<32x64xf32>
    %cst_50 = arith.constant dense<0.000000e+00> : vector<8x64xf32>
    %138 = tpu.matmul %136, %137, %cst_50 {dimension_numbers = #tpu.dot_dimension_numbers<[1], [0], [0], [1], [0, 0, 1, 1], [], []>} : vector<8x32xf32>, vector<32x64xf32>, vector<8x64xf32> -> vector<8x64xf32>
    %c606 = arith.constant 606 : index
    %c0_51 = arith.constant 0 : index
    %139 = vector.load %arg2[%c606, %c0_51] : memref<632x128xf32, #tpu.memory_space<vmem>>, vector<1x64xf32>
    %140 = vector.broadcast %139 : vector<1x64xf32> to vector<8x64xf32>
    %141 = arith.addf %138, %140 : vector<8x64xf32>
    %142 = vector.extract_strided_slice %141 {offsets = [0, 0], sizes = [8, 32], strides = [1, 1]} : vector<8x64xf32> to vector<8x32xf32>
    %143 = vector.extract_strided_slice %141 {offsets = [0, 32], sizes = [8, 32], strides = [1, 1]} : vector<8x64xf32> to vector<8x32xf32>
    %cst_52 = arith.constant 0.000000e+00 : f32
    %144 = vector.broadcast %cst_52 : f32 to vector<8x32xf32>
    %145 = arith.maximumf %143, %144 : vector<8x32xf32>
    %c528 = arith.constant 528 : index
    %c0_53 = arith.constant 0 : index
    %146 = vector.load %arg2[%c528, %c0_53] : memref<632x128xf32, #tpu.memory_space<vmem>>, vector<32x64xf32>
    %cst_54 = arith.constant dense<0.000000e+00> : vector<8x64xf32>
    %147 = tpu.matmul %145, %146, %cst_54 {dimension_numbers = #tpu.dot_dimension_numbers<[1], [0], [0], [1], [0, 0, 1, 1], [], []>} : vector<8x32xf32>, vector<32x64xf32>, vector<8x64xf32> -> vector<8x64xf32>
    %c625 = arith.constant 625 : index
    %c0_55 = arith.constant 0 : index
    %148 = vector.load %arg2[%c625, %c0_55] : memref<632x128xf32, #tpu.memory_space<vmem>>, vector<1x64xf32>
    %149 = vector.broadcast %148 : vector<1x64xf32> to vector<8x64xf32>
    %150 = arith.addf %147, %149 : vector<8x64xf32>
    %c272 = arith.constant 272 : index
    %c0_56 = arith.constant 0 : index
    %151 = vector.load %arg2[%c272, %c0_56] : memref<632x128xf32, #tpu.memory_space<vmem>>, vector<32x32xf32>
    %cst_57 = arith.constant dense<0.000000e+00> : vector<8x32xf32>
    %152 = tpu.matmul %145, %151, %cst_57 {dimension_numbers = #tpu.dot_dimension_numbers<[1], [0], [0], [1], [0, 0, 1, 1], [], []>} : vector<8x32xf32>, vector<32x32xf32>, vector<8x32xf32> -> vector<8x32xf32>
    %c607 = arith.constant 607 : index
    %c0_58 = arith.constant 0 : index
    %153 = vector.load %arg2[%c607, %c0_58] : memref<632x128xf32, #tpu.memory_space<vmem>>, vector<1x32xf32>
    %154 = vector.broadcast %153 : vector<1x32xf32> to vector<8x32xf32>
    %155 = arith.addf %152, %154 : vector<8x32xf32>
    %156 = arith.addf %145, %155 : vector<8x32xf32>
    %cst_59 = arith.constant dense<0.000000e+00> : vector<8xf32>
    %157 = vector.multi_reduction <add>, %156, %cst_59 [1] : vector<8x32xf32> to vector<8xf32>
    %158 = vector.shape_cast %157 : vector<8xf32> to vector<8x1xf32>
    %cst_60 = arith.constant 3.200000e+01 : f32
    %159 = vector.broadcast %cst_60 : f32 to vector<8x1xf32>
    %160 = arith.divf %158, %159 : vector<8x1xf32>
    %161 = arith.mulf %156, %156 : vector<8x32xf32>
    %cst_61 = arith.constant dense<0.000000e+00> : vector<8xf32>
    %162 = vector.multi_reduction <add>, %161, %cst_61 [1] : vector<8x32xf32> to vector<8xf32>
    %163 = vector.shape_cast %162 : vector<8xf32> to vector<8x1xf32>
    %cst_62 = arith.constant 3.200000e+01 : f32
    %164 = vector.broadcast %cst_62 : f32 to vector<8x1xf32>
    %165 = arith.divf %163, %164 : vector<8x1xf32>
    %166 = arith.mulf %160, %160 : vector<8x1xf32>
    %167 = arith.subf %165, %166 : vector<8x1xf32>
    %168 = vector.broadcast %160 : vector<8x1xf32> to vector<8x32xf32>
    %169 = arith.subf %156, %168 : vector<8x32xf32>
    %cst_63 = arith.constant 9.99999974E-6 : f32
    %170 = vector.broadcast %cst_63 : f32 to vector<8x1xf32>
    %171 = arith.addf %167, %170 : vector<8x1xf32>
    %172 = math.rsqrt %171 : vector<8x1xf32>
    %173 = vector.broadcast %172 : vector<8x1xf32> to vector<8x32xf32>
    %174 = arith.mulf %169, %173 : vector<8x32xf32>
    %c608 = arith.constant 608 : index
    %c0_64 = arith.constant 0 : index
    %175 = vector.load %arg2[%c608, %c0_64] : memref<632x128xf32, #tpu.memory_space<vmem>>, vector<1x32xf32>
    %176 = vector.broadcast %175 : vector<1x32xf32> to vector<8x32xf32>
    %177 = arith.mulf %174, %176 : vector<8x32xf32>
    %c609 = arith.constant 609 : index
    %c0_65 = arith.constant 0 : index
    %178 = vector.load %arg2[%c609, %c0_65] : memref<632x128xf32, #tpu.memory_space<vmem>>, vector<1x32xf32>
    %179 = vector.broadcast %178 : vector<1x32xf32> to vector<8x32xf32>
    %180 = arith.addf %177, %179 : vector<8x32xf32>
    %181 = vector.extract_strided_slice %150 {offsets = [0, 0], sizes = [8, 32], strides = [1, 1]} : vector<8x64xf32> to vector<8x32xf32>
    %182 = arith.addf %180, %181 : vector<8x32xf32>
    %cst_66 = arith.constant dense<0.000000e+00> : vector<8xf32>
    %183 = vector.multi_reduction <add>, %182, %cst_66 [1] : vector<8x32xf32> to vector<8xf32>
    %184 = vector.shape_cast %183 : vector<8xf32> to vector<8x1xf32>
    %cst_67 = arith.constant 3.200000e+01 : f32
    %185 = vector.broadcast %cst_67 : f32 to vector<8x1xf32>
    %186 = arith.divf %184, %185 : vector<8x1xf32>
    %187 = arith.mulf %182, %182 : vector<8x32xf32>
    %cst_68 = arith.constant dense<0.000000e+00> : vector<8xf32>
    %188 = vector.multi_reduction <add>, %187, %cst_68 [1] : vector<8x32xf32> to vector<8xf32>
    %189 = vector.shape_cast %188 : vector<8xf32> to vector<8x1xf32>
    %cst_69 = arith.constant 3.200000e+01 : f32
    %190 = vector.broadcast %cst_69 : f32 to vector<8x1xf32>
    %191 = arith.divf %189, %190 : vector<8x1xf32>
    %192 = arith.mulf %186, %186 : vector<8x1xf32>
    %193 = arith.subf %191, %192 : vector<8x1xf32>
    %194 = vector.broadcast %186 : vector<8x1xf32> to vector<8x32xf32>
    %195 = arith.subf %182, %194 : vector<8x32xf32>
    %cst_70 = arith.constant 9.99999974E-6 : f32
    %196 = vector.broadcast %cst_70 : f32 to vector<8x1xf32>
    %197 = arith.addf %193, %196 : vector<8x1xf32>
    %198 = math.rsqrt %197 : vector<8x1xf32>
    %199 = vector.broadcast %198 : vector<8x1xf32> to vector<8x32xf32>
    %200 = arith.mulf %195, %199 : vector<8x32xf32>
    %c610 = arith.constant 610 : index
    %c0_71 = arith.constant 0 : index
    %201 = vector.load %arg2[%c610, %c0_71] : memref<632x128xf32, #tpu.memory_space<vmem>>, vector<1x32xf32>
    %202 = vector.broadcast %201 : vector<1x32xf32> to vector<8x32xf32>
    %203 = arith.mulf %200, %202 : vector<8x32xf32>
    %c611 = arith.constant 611 : index
    %c0_72 = arith.constant 0 : index
    %204 = vector.load %arg2[%c611, %c0_72] : memref<632x128xf32, #tpu.memory_space<vmem>>, vector<1x32xf32>
    %205 = vector.broadcast %204 : vector<1x32xf32> to vector<8x32xf32>
    %206 = arith.addf %203, %205 : vector<8x32xf32>
    %c304 = arith.constant 304 : index
    %c0_73 = arith.constant 0 : index
    %207 = vector.load %arg2[%c304, %c0_73] : memref<632x128xf32, #tpu.memory_space<vmem>>, vector<32x64xf32>
    %cst_74 = arith.constant dense<0.000000e+00> : vector<8x64xf32>
    %208 = tpu.matmul %206, %207, %cst_74 {dimension_numbers = #tpu.dot_dimension_numbers<[1], [0], [0], [1], [0, 0, 1, 1], [], []>} : vector<8x32xf32>, vector<32x64xf32>, vector<8x64xf32> -> vector<8x64xf32>
    %c612 = arith.constant 612 : index
    %c0_75 = arith.constant 0 : index
    %209 = vector.load %arg2[%c612, %c0_75] : memref<632x128xf32, #tpu.memory_space<vmem>>, vector<1x64xf32>
    %210 = vector.broadcast %209 : vector<1x64xf32> to vector<8x64xf32>
    %211 = arith.addf %208, %210 : vector<8x64xf32>
    %cst_76 = arith.constant 0.000000e+00 : f32
    %212 = vector.broadcast %cst_76 : f32 to vector<8x64xf32>
    %213 = arith.maximumf %211, %212 : vector<8x64xf32>
    %c336 = arith.constant 336 : index
    %c0_77 = arith.constant 0 : index
    %214 = vector.load %arg2[%c336, %c0_77] : memref<632x128xf32, #tpu.memory_space<vmem>>, vector<64x32xf32>
    %cst_78 = arith.constant dense<0.000000e+00> : vector<8x32xf32>
    %215 = tpu.matmul %213, %214, %cst_78 {dimension_numbers = #tpu.dot_dimension_numbers<[1], [0], [0], [1], [0, 0, 1, 1], [], []>} : vector<8x64xf32>, vector<64x32xf32>, vector<8x32xf32> -> vector<8x32xf32>
    %c613 = arith.constant 613 : index
    %c0_79 = arith.constant 0 : index
    %216 = vector.load %arg2[%c613, %c0_79] : memref<632x128xf32, #tpu.memory_space<vmem>>, vector<1x32xf32>
    %217 = vector.broadcast %216 : vector<1x32xf32> to vector<8x32xf32>
    %218 = arith.addf %215, %217 : vector<8x32xf32>
    %219 = arith.addf %206, %218 : vector<8x32xf32>
    %cst_80 = arith.constant dense<0.000000e+00> : vector<8xf32>
    %220 = vector.multi_reduction <add>, %219, %cst_80 [1] : vector<8x32xf32> to vector<8xf32>
    %221 = vector.shape_cast %220 : vector<8xf32> to vector<8x1xf32>
    %cst_81 = arith.constant 3.200000e+01 : f32
    %222 = vector.broadcast %cst_81 : f32 to vector<8x1xf32>
    %223 = arith.divf %221, %222 : vector<8x1xf32>
    %224 = arith.mulf %219, %219 : vector<8x32xf32>
    %cst_82 = arith.constant dense<0.000000e+00> : vector<8xf32>
    %225 = vector.multi_reduction <add>, %224, %cst_82 [1] : vector<8x32xf32> to vector<8xf32>
    %226 = vector.shape_cast %225 : vector<8xf32> to vector<8x1xf32>
    %cst_83 = arith.constant 3.200000e+01 : f32
    %227 = vector.broadcast %cst_83 : f32 to vector<8x1xf32>
    %228 = arith.divf %226, %227 : vector<8x1xf32>
    %229 = arith.mulf %223, %223 : vector<8x1xf32>
    %230 = arith.subf %228, %229 : vector<8x1xf32>
    %231 = vector.broadcast %223 : vector<8x1xf32> to vector<8x32xf32>
    %232 = arith.subf %219, %231 : vector<8x32xf32>
    %cst_84 = arith.constant 9.99999974E-6 : f32
    %233 = vector.broadcast %cst_84 : f32 to vector<8x1xf32>
    %234 = arith.addf %230, %233 : vector<8x1xf32>
    %235 = math.rsqrt %234 : vector<8x1xf32>
    %236 = vector.broadcast %235 : vector<8x1xf32> to vector<8x32xf32>
    %237 = arith.mulf %232, %236 : vector<8x32xf32>
    %c614 = arith.constant 614 : index
    %c0_85 = arith.constant 0 : index
    %238 = vector.load %arg2[%c614, %c0_85] : memref<632x128xf32, #tpu.memory_space<vmem>>, vector<1x32xf32>
    %239 = vector.broadcast %238 : vector<1x32xf32> to vector<8x32xf32>
    %240 = arith.mulf %237, %239 : vector<8x32xf32>
    %c615 = arith.constant 615 : index
    %c0_86 = arith.constant 0 : index
    %241 = vector.load %arg2[%c615, %c0_86] : memref<632x128xf32, #tpu.memory_space<vmem>>, vector<1x32xf32>
    %242 = vector.broadcast %241 : vector<1x32xf32> to vector<8x32xf32>
    %243 = arith.addf %240, %242 : vector<8x32xf32>
    %c400 = arith.constant 400 : index
    %c0_87 = arith.constant 0 : index
    %244 = vector.load %arg2[%c400, %c0_87] : memref<632x128xf32, #tpu.memory_space<vmem>>, vector<32x32xf32>
    %cst_88 = arith.constant dense<0.000000e+00> : vector<8x32xf32>
    %245 = tpu.matmul %243, %244, %cst_88 {dimension_numbers = #tpu.dot_dimension_numbers<[1], [0], [0], [1], [0, 0, 1, 1], [], []>} : vector<8x32xf32>, vector<32x32xf32>, vector<8x32xf32> -> vector<8x32xf32>
    %c616 = arith.constant 616 : index
    %c0_89 = arith.constant 0 : index
    %246 = vector.load %arg2[%c616, %c0_89] : memref<632x128xf32, #tpu.memory_space<vmem>>, vector<1x32xf32>
    %247 = vector.broadcast %246 : vector<1x32xf32> to vector<8x32xf32>
    %248 = arith.addf %245, %247 : vector<8x32xf32>
    %249 = arith.addf %243, %248 : vector<8x32xf32>
    %cst_90 = arith.constant dense<0.000000e+00> : vector<8xf32>
    %250 = vector.multi_reduction <add>, %249, %cst_90 [1] : vector<8x32xf32> to vector<8xf32>
    %251 = vector.shape_cast %250 : vector<8xf32> to vector<8x1xf32>
    %cst_91 = arith.constant 3.200000e+01 : f32
    %252 = vector.broadcast %cst_91 : f32 to vector<8x1xf32>
    %253 = arith.divf %251, %252 : vector<8x1xf32>
    %254 = arith.mulf %249, %249 : vector<8x32xf32>
    %cst_92 = arith.constant dense<0.000000e+00> : vector<8xf32>
    %255 = vector.multi_reduction <add>, %254, %cst_92 [1] : vector<8x32xf32> to vector<8xf32>
    %256 = vector.shape_cast %255 : vector<8xf32> to vector<8x1xf32>
    %cst_93 = arith.constant 3.200000e+01 : f32
    %257 = vector.broadcast %cst_93 : f32 to vector<8x1xf32>
    %258 = arith.divf %256, %257 : vector<8x1xf32>
    %259 = arith.mulf %253, %253 : vector<8x1xf32>
    %260 = arith.subf %258, %259 : vector<8x1xf32>
    %261 = vector.broadcast %253 : vector<8x1xf32> to vector<8x32xf32>
    %262 = arith.subf %249, %261 : vector<8x32xf32>
    %cst_94 = arith.constant 9.99999974E-6 : f32
    %263 = vector.broadcast %cst_94 : f32 to vector<8x1xf32>
    %264 = arith.addf %260, %263 : vector<8x1xf32>
    %265 = math.rsqrt %264 : vector<8x1xf32>
    %266 = vector.broadcast %265 : vector<8x1xf32> to vector<8x32xf32>
    %267 = arith.mulf %262, %266 : vector<8x32xf32>
    %c617 = arith.constant 617 : index
    %c0_95 = arith.constant 0 : index
    %268 = vector.load %arg2[%c617, %c0_95] : memref<632x128xf32, #tpu.memory_space<vmem>>, vector<1x32xf32>
    %269 = vector.broadcast %268 : vector<1x32xf32> to vector<8x32xf32>
    %270 = arith.mulf %267, %269 : vector<8x32xf32>
    %c618 = arith.constant 618 : index
    %c0_96 = arith.constant 0 : index
    %271 = vector.load %arg2[%c618, %c0_96] : memref<632x128xf32, #tpu.memory_space<vmem>>, vector<1x32xf32>
    %272 = vector.broadcast %271 : vector<1x32xf32> to vector<8x32xf32>
    %273 = arith.addf %270, %272 : vector<8x32xf32>
    %274 = vector.extract_strided_slice %150 {offsets = [0, 32], sizes = [8, 32], strides = [1, 1]} : vector<8x64xf32> to vector<8x32xf32>
    %275 = arith.addf %273, %274 : vector<8x32xf32>
    %cst_97 = arith.constant dense<0.000000e+00> : vector<8xf32>
    %276 = vector.multi_reduction <add>, %275, %cst_97 [1] : vector<8x32xf32> to vector<8xf32>
    %277 = vector.shape_cast %276 : vector<8xf32> to vector<8x1xf32>
    %cst_98 = arith.constant 3.200000e+01 : f32
    %278 = vector.broadcast %cst_98 : f32 to vector<8x1xf32>
    %279 = arith.divf %277, %278 : vector<8x1xf32>
    %280 = arith.mulf %275, %275 : vector<8x32xf32>
    %cst_99 = arith.constant dense<0.000000e+00> : vector<8xf32>
    %281 = vector.multi_reduction <add>, %280, %cst_99 [1] : vector<8x32xf32> to vector<8xf32>
    %282 = vector.shape_cast %281 : vector<8xf32> to vector<8x1xf32>
    %cst_100 = arith.constant 3.200000e+01 : f32
    %283 = vector.broadcast %cst_100 : f32 to vector<8x1xf32>
    %284 = arith.divf %282, %283 : vector<8x1xf32>
    %285 = arith.mulf %279, %279 : vector<8x1xf32>
    %286 = arith.subf %284, %285 : vector<8x1xf32>
    %287 = vector.broadcast %279 : vector<8x1xf32> to vector<8x32xf32>
    %288 = arith.subf %275, %287 : vector<8x32xf32>
    %cst_101 = arith.constant 9.99999974E-6 : f32
    %289 = vector.broadcast %cst_101 : f32 to vector<8x1xf32>
    %290 = arith.addf %286, %289 : vector<8x1xf32>
    %291 = math.rsqrt %290 : vector<8x1xf32>
    %292 = vector.broadcast %291 : vector<8x1xf32> to vector<8x32xf32>
    %293 = arith.mulf %288, %292 : vector<8x32xf32>
    %c619 = arith.constant 619 : index
    %c0_102 = arith.constant 0 : index
    %294 = vector.load %arg2[%c619, %c0_102] : memref<632x128xf32, #tpu.memory_space<vmem>>, vector<1x32xf32>
    %295 = vector.broadcast %294 : vector<1x32xf32> to vector<8x32xf32>
    %296 = arith.mulf %293, %295 : vector<8x32xf32>
    %c620 = arith.constant 620 : index
    %c0_103 = arith.constant 0 : index
    %297 = vector.load %arg2[%c620, %c0_103] : memref<632x128xf32, #tpu.memory_space<vmem>>, vector<1x32xf32>
    %298 = vector.broadcast %297 : vector<1x32xf32> to vector<8x32xf32>
    %299 = arith.addf %296, %298 : vector<8x32xf32>
    %c432 = arith.constant 432 : index
    %c0_104 = arith.constant 0 : index
    %300 = vector.load %arg2[%c432, %c0_104] : memref<632x128xf32, #tpu.memory_space<vmem>>, vector<32x64xf32>
    %cst_105 = arith.constant dense<0.000000e+00> : vector<8x64xf32>
    %301 = tpu.matmul %299, %300, %cst_105 {dimension_numbers = #tpu.dot_dimension_numbers<[1], [0], [0], [1], [0, 0, 1, 1], [], []>} : vector<8x32xf32>, vector<32x64xf32>, vector<8x64xf32> -> vector<8x64xf32>
    %c621 = arith.constant 621 : index
    %c0_106 = arith.constant 0 : index
    %302 = vector.load %arg2[%c621, %c0_106] : memref<632x128xf32, #tpu.memory_space<vmem>>, vector<1x64xf32>
    %303 = vector.broadcast %302 : vector<1x64xf32> to vector<8x64xf32>
    %304 = arith.addf %301, %303 : vector<8x64xf32>
    %cst_107 = arith.constant 0.000000e+00 : f32
    %305 = vector.broadcast %cst_107 : f32 to vector<8x64xf32>
    %306 = arith.maximumf %304, %305 : vector<8x64xf32>
    %c464 = arith.constant 464 : index
    %c0_108 = arith.constant 0 : index
    %307 = vector.load %arg2[%c464, %c0_108] : memref<632x128xf32, #tpu.memory_space<vmem>>, vector<64x32xf32>
    %cst_109 = arith.constant dense<0.000000e+00> : vector<8x32xf32>
    %308 = tpu.matmul %306, %307, %cst_109 {dimension_numbers = #tpu.dot_dimension_numbers<[1], [0], [0], [1], [0, 0, 1, 1], [], []>} : vector<8x64xf32>, vector<64x32xf32>, vector<8x32xf32> -> vector<8x32xf32>
    %c622 = arith.constant 622 : index
    %c0_110 = arith.constant 0 : index
    %309 = vector.load %arg2[%c622, %c0_110] : memref<632x128xf32, #tpu.memory_space<vmem>>, vector<1x32xf32>
    %310 = vector.broadcast %309 : vector<1x32xf32> to vector<8x32xf32>
    %311 = arith.addf %308, %310 : vector<8x32xf32>
    %312 = arith.addf %299, %311 : vector<8x32xf32>
    %cst_111 = arith.constant dense<0.000000e+00> : vector<8xf32>
    %313 = vector.multi_reduction <add>, %312, %cst_111 [1] : vector<8x32xf32> to vector<8xf32>
    %314 = vector.shape_cast %313 : vector<8xf32> to vector<8x1xf32>
    %cst_112 = arith.constant 3.200000e+01 : f32
    %315 = vector.broadcast %cst_112 : f32 to vector<8x1xf32>
    %316 = arith.divf %314, %315 : vector<8x1xf32>
    %317 = arith.mulf %312, %312 : vector<8x32xf32>
    %cst_113 = arith.constant dense<0.000000e+00> : vector<8xf32>
    %318 = vector.multi_reduction <add>, %317, %cst_113 [1] : vector<8x32xf32> to vector<8xf32>
    %319 = vector.shape_cast %318 : vector<8xf32> to vector<8x1xf32>
    %cst_114 = arith.constant 3.200000e+01 : f32
    %320 = vector.broadcast %cst_114 : f32 to vector<8x1xf32>
    %321 = arith.divf %319, %320 : vector<8x1xf32>
    %322 = arith.mulf %316, %316 : vector<8x1xf32>
    %323 = arith.subf %321, %322 : vector<8x1xf32>
    %324 = vector.broadcast %316 : vector<8x1xf32> to vector<8x32xf32>
    %325 = arith.subf %312, %324 : vector<8x32xf32>
    %cst_115 = arith.constant 9.99999974E-6 : f32
    %326 = vector.broadcast %cst_115 : f32 to vector<8x1xf32>
    %327 = arith.addf %323, %326 : vector<8x1xf32>
    %328 = math.rsqrt %327 : vector<8x1xf32>
    %329 = vector.broadcast %328 : vector<8x1xf32> to vector<8x32xf32>
    %330 = arith.mulf %325, %329 : vector<8x32xf32>
    %c623 = arith.constant 623 : index
    %c0_116 = arith.constant 0 : index
    %331 = vector.load %arg2[%c623, %c0_116] : memref<632x128xf32, #tpu.memory_space<vmem>>, vector<1x32xf32>
    %332 = vector.broadcast %331 : vector<1x32xf32> to vector<8x32xf32>
    %333 = arith.mulf %330, %332 : vector<8x32xf32>
    %c624 = arith.constant 624 : index
    %c0_117 = arith.constant 0 : index
    %334 = vector.load %arg2[%c624, %c0_117] : memref<632x128xf32, #tpu.memory_space<vmem>>, vector<1x32xf32>
    %335 = vector.broadcast %334 : vector<1x32xf32> to vector<8x32xf32>
    %336 = arith.addf %333, %335 : vector<8x32xf32>
    %c560 = arith.constant 560 : index
    %c0_118 = arith.constant 0 : index
    %337 = vector.load %arg2[%c560, %c0_118] : memref<632x128xf32, #tpu.memory_space<vmem>>, vector<32x16xf32>
    %cst_119 = arith.constant dense<0.000000e+00> : vector<8x16xf32>
    %338 = tpu.matmul %336, %337, %cst_119 {dimension_numbers = #tpu.dot_dimension_numbers<[1], [0], [0], [1], [0, 0, 1, 1], [], []>} : vector<8x32xf32>, vector<32x16xf32>, vector<8x16xf32> -> vector<8x16xf32>
    %c626 = arith.constant 626 : index
    %c0_120 = arith.constant 0 : index
    %339 = vector.load %arg2[%c626, %c0_120] : memref<632x128xf32, #tpu.memory_space<vmem>>, vector<1x16xf32>
    %340 = vector.broadcast %339 : vector<1x16xf32> to vector<8x16xf32>
    %341 = arith.addf %338, %340 : vector<8x16xf32>
    %c0_121 = arith.constant 0 : index
    %c0_122 = arith.constant 0 : index
    %342 = vector.load %arg3[%c0_121, %c0_122] : memref<8x128xf32, #tpu.memory_space<vmem>>, vector<8x16xf32>
    tpu.vector_store %arg3[%c0_121, %c0_122], %341 {strides = array<i32>} : memref<8x128xf32, #tpu.memory_space<vmem>>, vector<8x16xf32>,
    %c0_123 = arith.constant 0 : index
    %c48_124 = arith.constant 48 : index
    %343 = vector.load %arg3[%c0_123, %c48_124] : memref<8x128xf32, #tpu.memory_space<vmem>>, vector<8x32xf32>
    tpu.vector_store %arg3[%c0_123, %c48_124], %142 {strides = array<i32>} : memref<8x128xf32, #tpu.memory_space<vmem>>, vector<8x32xf32>,
    %344 = tpu.iota {dimensions = array<i32: 1>} : vector<8x8xi32>
    %345 = vector.extract_strided_slice %142 {offsets = [0, 0], sizes = [8, 8], strides = [1, 1]} : vector<8x32xf32> to vector<8x8xf32>
    %cst_125 = arith.constant dense<0xFF800000> : vector<8xf32>
    %346 = vector.multi_reduction <maximumf>, %345, %cst_125 [1] : vector<8x8xf32> to vector<8xf32>
    %347 = vector.shape_cast %346 : vector<8xf32> to vector<8x1xf32>
    %348 = vector.broadcast %347 : vector<8x1xf32> to vector<8x8xf32>
    %349 = arith.cmpf oeq, %345, %348 : vector<8x8xf32>
    %c8_i32 = arith.constant 8 : i32
    %350 = vector.broadcast %c8_i32 : i32 to vector<8x8xi32>
    %351 = arith.select %349, %344, %350 : vector<8x8xi1>, vector<8x8xi32>
    %cst_126 = arith.constant dense<2147483647> : vector<8xi32>
    %352 = vector.multi_reduction <minsi>, %351, %cst_126 [1] : vector<8x8xi32> to vector<8xi32>
    %353 = vector.shape_cast %352 : vector<8xi32> to vector<8x1xi32>
    %354 = vector.broadcast %353 : vector<8x1xi32> to vector<8x8xi32>
    %355 = arith.cmpi eq, %344, %354 : vector<8x8xi32>
    %356 = arith.extui %355 : vector<8x8xi1> to vector<8x8xi32>
    %357 = arith.sitofp %356 : vector<8x8xi32> to vector<8x8xf32>
    %c0_127 = arith.constant 0 : index
    %c16_128 = arith.constant 16 : index
    %358 = vector.load %arg3[%c0_127, %c16_128] : memref<8x128xf32, #tpu.memory_space<vmem>>, vector<8x8xf32>
    tpu.vector_store %arg3[%c0_127, %c16_128], %357 {strides = array<i32>} : memref<8x128xf32, #tpu.memory_space<vmem>>, vector<8x8xf32>,
    %359 = arith.sitofp %353 : vector<8x1xi32> to vector<8x1xf32>
    %c0_129 = arith.constant 0 : index
    %c80 = arith.constant 80 : index
    %360 = vector.load %arg3[%c0_129, %c80] : memref<8x128xf32, #tpu.memory_space<vmem>>, vector<8x1xf32>
    tpu.vector_store %arg3[%c0_129, %c80], %359 {strides = array<i32>} : memref<8x128xf32, #tpu.memory_space<vmem>>, vector<8x1xf32>,
    %361 = vector.extract_strided_slice %142 {offsets = [0, 8], sizes = [8, 8], strides = [1, 1]} : vector<8x32xf32> to vector<8x8xf32>
    %cst_130 = arith.constant dense<0xFF800000> : vector<8xf32>
    %362 = vector.multi_reduction <maximumf>, %361, %cst_130 [1] : vector<8x8xf32> to vector<8xf32>
    %363 = vector.shape_cast %362 : vector<8xf32> to vector<8x1xf32>
    %364 = vector.broadcast %363 : vector<8x1xf32> to vector<8x8xf32>
    %365 = arith.cmpf oeq, %361, %364 : vector<8x8xf32>
    %c8_i32_131 = arith.constant 8 : i32
    %366 = vector.broadcast %c8_i32_131 : i32 to vector<8x8xi32>
    %367 = arith.select %365, %344, %366 : vector<8x8xi1>, vector<8x8xi32>
    %cst_132 = arith.constant dense<2147483647> : vector<8xi32>
    %368 = vector.multi_reduction <minsi>, %367, %cst_132 [1] : vector<8x8xi32> to vector<8xi32>
    %369 = vector.shape_cast %368 : vector<8xi32> to vector<8x1xi32>
    %370 = vector.broadcast %369 : vector<8x1xi32> to vector<8x8xi32>
    %371 = arith.cmpi eq, %344, %370 : vector<8x8xi32>
    %372 = arith.extui %371 : vector<8x8xi1> to vector<8x8xi32>
    %373 = arith.sitofp %372 : vector<8x8xi32> to vector<8x8xf32>
    %c0_133 = arith.constant 0 : index
    %c24 = arith.constant 24 : index
    %374 = vector.load %arg3[%c0_133, %c24] : memref<8x128xf32, #tpu.memory_space<vmem>>, vector<8x8xf32>
    tpu.vector_store %arg3[%c0_133, %c24], %373 {strides = array<i32>} : memref<8x128xf32, #tpu.memory_space<vmem>>, vector<8x8xf32>,
    %375 = arith.sitofp %369 : vector<8x1xi32> to vector<8x1xf32>
    %c0_134 = arith.constant 0 : index
    %c81 = arith.constant 81 : index
    %376 = vector.load %arg3[%c0_134, %c81] : memref<8x128xf32, #tpu.memory_space<vmem>>, vector<8x1xf32>
    tpu.vector_store %arg3[%c0_134, %c81], %375 {strides = array<i32>} : memref<8x128xf32, #tpu.memory_space<vmem>>, vector<8x1xf32>,
    %377 = vector.extract_strided_slice %142 {offsets = [0, 16], sizes = [8, 8], strides = [1, 1]} : vector<8x32xf32> to vector<8x8xf32>
    %cst_135 = arith.constant dense<0xFF800000> : vector<8xf32>
    %378 = vector.multi_reduction <maximumf>, %377, %cst_135 [1] : vector<8x8xf32> to vector<8xf32>
    %379 = vector.shape_cast %378 : vector<8xf32> to vector<8x1xf32>
    %380 = vector.broadcast %379 : vector<8x1xf32> to vector<8x8xf32>
    %381 = arith.cmpf oeq, %377, %380 : vector<8x8xf32>
    %c8_i32_136 = arith.constant 8 : i32
    %382 = vector.broadcast %c8_i32_136 : i32 to vector<8x8xi32>
    %383 = arith.select %381, %344, %382 : vector<8x8xi1>, vector<8x8xi32>
    %cst_137 = arith.constant dense<2147483647> : vector<8xi32>
    %384 = vector.multi_reduction <minsi>, %383, %cst_137 [1] : vector<8x8xi32> to vector<8xi32>
    %385 = vector.shape_cast %384 : vector<8xi32> to vector<8x1xi32>
    %386 = vector.broadcast %385 : vector<8x1xi32> to vector<8x8xi32>
    %387 = arith.cmpi eq, %344, %386 : vector<8x8xi32>
    %388 = arith.extui %387 : vector<8x8xi1> to vector<8x8xi32>
    %389 = arith.sitofp %388 : vector<8x8xi32> to vector<8x8xf32>
    %c0_138 = arith.constant 0 : index
    %c32 = arith.constant 32 : index
    %390 = vector.load %arg3[%c0_138, %c32] : memref<8x128xf32, #tpu.memory_space<vmem>>, vector<8x8xf32>
    tpu.vector_store %arg3[%c0_138, %c32], %389 {strides = array<i32>} : memref<8x128xf32, #tpu.memory_space<vmem>>, vector<8x8xf32>,
    %391 = arith.sitofp %385 : vector<8x1xi32> to vector<8x1xf32>
    %c0_139 = arith.constant 0 : index
    %c82 = arith.constant 82 : index
    %392 = vector.load %arg3[%c0_139, %c82] : memref<8x128xf32, #tpu.memory_space<vmem>>, vector<8x1xf32>
    tpu.vector_store %arg3[%c0_139, %c82], %391 {strides = array<i32>} : memref<8x128xf32, #tpu.memory_space<vmem>>, vector<8x1xf32>,
    %393 = vector.extract_strided_slice %142 {offsets = [0, 24], sizes = [8, 8], strides = [1, 1]} : vector<8x32xf32> to vector<8x8xf32>
    %cst_140 = arith.constant dense<0xFF800000> : vector<8xf32>
    %394 = vector.multi_reduction <maximumf>, %393, %cst_140 [1] : vector<8x8xf32> to vector<8xf32>
    %395 = vector.shape_cast %394 : vector<8xf32> to vector<8x1xf32>
    %396 = vector.broadcast %395 : vector<8x1xf32> to vector<8x8xf32>
    %397 = arith.cmpf oeq, %393, %396 : vector<8x8xf32>
    %c8_i32_141 = arith.constant 8 : i32
    %398 = vector.broadcast %c8_i32_141 : i32 to vector<8x8xi32>
    %399 = arith.select %397, %344, %398 : vector<8x8xi1>, vector<8x8xi32>
    %cst_142 = arith.constant dense<2147483647> : vector<8xi32>
    %400 = vector.multi_reduction <minsi>, %399, %cst_142 [1] : vector<8x8xi32> to vector<8xi32>
    %401 = vector.shape_cast %400 : vector<8xi32> to vector<8x1xi32>
    %402 = vector.broadcast %401 : vector<8x1xi32> to vector<8x8xi32>
    %403 = arith.cmpi eq, %344, %402 : vector<8x8xi32>
    %404 = arith.extui %403 : vector<8x8xi1> to vector<8x8xi32>
    %405 = arith.sitofp %404 : vector<8x8xi32> to vector<8x8xf32>
    %c0_143 = arith.constant 0 : index
    %c40 = arith.constant 40 : index
    %406 = vector.load %arg3[%c0_143, %c40] : memref<8x128xf32, #tpu.memory_space<vmem>>, vector<8x8xf32>
    tpu.vector_store %arg3[%c0_143, %c40], %405 {strides = array<i32>} : memref<8x128xf32, #tpu.memory_space<vmem>>, vector<8x8xf32>,
    %407 = arith.sitofp %401 : vector<8x1xi32> to vector<8x1xf32>
    %c0_144 = arith.constant 0 : index
    %c83 = arith.constant 83 : index
    %408 = vector.load %arg3[%c0_144, %c83] : memref<8x128xf32, #tpu.memory_space<vmem>>, vector<8x1xf32>
    tpu.vector_store %arg3[%c0_144, %c83], %407 {strides = array<i32>} : memref<8x128xf32, #tpu.memory_space<vmem>>, vector<8x1xf32>,
    %cst_145 = arith.constant 0.000000e+00 : f32
    %409 = vector.broadcast %cst_145 : f32 to vector<8x44xf32>
    %c0_146 = arith.constant 0 : index
    %c84 = arith.constant 84 : index
    %410 = vector.load %arg3[%c0_146, %c84] : memref<8x128xf32, #tpu.memory_space<vmem>>, vector<8x44xf32>
    tpu.vector_store %arg3[%c0_146, %c84], %409 {strides = array<i32>} : memref<8x128xf32, #tpu.memory_space<vmem>>, vector<8x44xf32>,
    return
  }
  func.func @transform_0(%arg0: i32) -> (i32, i32) {
    %c0_i32 = arith.constant 0 : i32
    %c0_i32_0 = arith.constant 0 : i32
    return %arg0, %c0_i32 : i32, i32
  }
  func.func @transform_1(%arg0: i32) -> (i32, i32) {
    %c0_i32 = arith.constant 0 : i32
    %c0_i32_0 = arith.constant 0 : i32
    %c0_i32_1 = arith.constant 0 : i32
    return %c0_i32, %c0_i32_0 : i32, i32
  }
  func.func @transform_2(%arg0: i32) -> (i32, i32) {
    %c0_i32 = arith.constant 0 : i32
    %c0_i32_0 = arith.constant 0 : i32
    return %arg0, %c0_i32 : i32, i32
  }
}

</mosaic_0001>

<bundles_post_ra>
// kernel: tpu_custom_call.1
= control target key start
LH: loop header
LB: loop body
LE: loop exit
PB: predicated region body
PF: predicated region fallthrough
CT: control target
= control target key end

     0   :  { %7 = vsyncpa [#allocation3], 0  ;;  %s2678_s0 = inlined_call_operand.hbm [shape: f32[8,16], index: 0, kind: input, shape index: {}]   ;;  %s2679_s1 = inlined_call_operand.hbm [shape: f32[632,128], index: 1, kind: input, shape index: {}]   ;;  %s2680_s2 = inlined_call_operand.hbm [shape: f32[8,128], index: 2, kind: output, shape index: {}]  }
   0x1   :  { %8 = vsyncpa [#allocation6], 0 }
   0x2   :  { %9 = vsyncpa [#allocation4], 0  ;;  %s2415_s9 = smov [#allocation2]   ;;  %s2416_s11 = smov [#allocation5]  }
   0x3   :  { %s16_s10 = sshll.u32 %s2415_s9, 4  ;;  %s25_s12 = sshll.u32 %s2416_s11, 4  ;;  %s17_s10 = int_to_ptr.vmem [resolvable:$true] %s16_s10  ;;  %s2444_s12 = int_to_ptr.vmem [resolvable:$true] %s25_s12 }
   0x4   :  { %s2343_s15 = scalar_lea.hbm %s2678_s0, 128 }
   0x5   :  { %p2344_p0 = scmp.ne.s32.totalorder %s2678_s0, %s2343_s15  ;;  %p2347_p1 = scmp.lt.u32.totalorder %s2343_s15, %s2678_s0 }
   0x7   :  { %p2349_p2 = pnand %p2347_p1, %p2344_p0 }
   0x9   :  { %2352 = shalt.err (!%p2349_p2)
}
   0xa   :  { %s2353_s20 = scalar_lea.vmem %s17_s10, 128  ;;  %p2358_p4 = scmp.lt.s32.totalorder %s17_s10, %s17_s10 }
   0xb   :  { %p2354_p3 = scmp.ne.s32.totalorder %s17_s10, %s2353_s20  ;;  %p2359_p5 = scmp.lt.s32.totalorder %s2353_s20, %s2353_s20 }
   0xd   :  { %p2360_p6 = por %p2359_p5, %p2358_p4 }
   0xf   :  { %p2361_p7 = pnand %p2360_p6, %p2354_p3 }
  0x11   :  { %2364 = shalt.err (!%p2361_p7)
}
  0x12   :  { %19 = dma.hbm_to_vmem [thread:$0]  %s2678_s0, 128, %s17_s10, [#allocation3]  }
  0x13   :  { %s2365_s25 = scalar_lea.hbm %s2679_s1, 10112 }
  0x14   :  { %p2366_p8 = scmp.ne.s32.totalorder %s2679_s1, %s2365_s25  ;;  %p2369_p9 = scmp.lt.u32.totalorder %s2365_s25, %s2679_s1 }
  0x16   :  { %p2371_p10 = pnand %p2369_p9, %p2366_p8 }
  0x18   :  { %2374 = shalt.err (!%p2371_p10)
}
  0x19   :  { %s2375_s30 = scalar_lea.vmem %s2444_s12, 10112  ;;  %p2380_p12 = scmp.lt.s32.totalorder %s2444_s12, %s2444_s12 }
  0x1a   :  { %p2376_p11 = scmp.ne.s32.totalorder %s2444_s12, %s2375_s30  ;;  %p2381_p13 = scmp.lt.s32.totalorder %s2375_s30, %s2375_s30 }
  0x1c   :  { %p2382_p0 = por %p2381_p13, %p2380_p12 }
  0x1e   :  { %p2383_p1 = pnand %p2382_p0, %p2376_p11 }
  0x20   :  { %2386 = shalt.err (!%p2383_p1)
}
  0x21   :  { %s2417_s0 = smov 128   ;;  %s2418_s3 = smov 8  }
  0x22   :  { %31 = dma.hbm_to_vmem [thread:$0]  %s2679_s1, 10112, %s2444_s12, [#allocation6], %s2417_s0, %s2417_s0, %s2418_s3  }
  0x23   :  { %2409 = dma.done.wait [#allocation3], 128  }
  0x24   :  { %2410 = vsyncadd [#allocation3], 4294967168 }
  0x25   :  { %2411 = dma.done.wait [#allocation6], 10112  }
  0x26   :  { %2412 = vsyncadd [#allocation6], 4294957184  ;;  %v2419_v0 = vmov 0.0|0.0   ;;  %vm2420_vm0 = vmmov 0   ;;  %v2421_v1 = vmov 0.0   ;;  %v39_v2 = vld [vmem:[#allocation5] sm:$0xff] }
  0x27   :  { %2198 = vmatprep.subr.bf16.mxu0 %v2419_v0  ;;  %2009 = vmatprep.mubr.msk.f32.mxu0 %vm2420_vm0, %v2421_v1  ;;  %v40_v3 = vld [vmem:[#allocation5 + $0x8] sm:$0xff]  ;;  %v38_v5 = vld [vmem:[#allocation2] sm:$0xff]  ;;  %vm46_vm1 = vcmask 130048   ;;  %v1862_v6 = vld [vmem:[#allocation5 + $0x250] ss:$0 sm:$0xff]  ;;  %s2422_s1 = smov 96  }
  0x28   :  { %2201 = vmatprep.subr.bf16.mxu1 %v2419_v0  ;;  %2020 = vmatprep.mubr.msk.f32.mxu1 %vm2420_vm0, %v2421_v1  ;;  %v2199_v4 = vpack.c.bf16 %v40_v3, %v39_v2  ;;  %vm125_vm2 = vcmask 261120   ;;  %v154_v15 = vld [vmem:[#allocation5 + $0x10] sm:$0xff]  ;;  %v155_v16 = vld [vmem:[#allocation5 + $0x18] sm:$0xff]  ;;  %v156_v17 = vld [vmem:[#allocation5 + $0x20] sm:$0xff]  ;;  %vm250_vm3 = vcmask 523264   ;;  %s2423_s6 = smov 32  }
  0x29   :  { %v2202_v18 = vpack.c.bf16 %v155_v16, %v154_v15  ;;  %v157_v19 = vld [vmem:[#allocation5 + $0x28] sm:$0xff]  ;;  %v237_v21 = vld [vmem:[#allocation5 + $0x30] sm:$0xff]  ;;  %v238_v22 = vld [vmem:[#allocation5 + $0x38] sm:$0xff]  ;;  %s2424_s7 = smov 48   ;;  %vm1708_vm4 = vcmask 64512   ;;  %vm1741_vm6 = vcmask 130112  }
  0x2a   :  { %2200 = vmatpush3.bf16.msra.mxu0 %v2199_v4  ;;  %v2205_v20 = vpack.c.bf16 %v157_v19, %v156_v17  ;;  %v239_v23 = vld [vmem:[#allocation5 + $0x40] sm:$0xff]  ;;  %v2208_v24 = vpack.c.bf16 %v238_v22, %v237_v21  ;;  %v240_v25 = vld [vmem:[#allocation5 + $0x48] sm:$0xff]  ;;  %v241_v27 = vld [vmem:[#allocation5 + $0x50] sm:$0xff]  ;;  %vm1736_vm7 = vcmask 195712   ;;  %vm1771_vm8 = vcmask 261312   ;;  %s2425_s8 = smov 16  }
  0x2b   :  { %2207 = vmatprep.subr.bf16.mxu0 %v2419_v0  ;;  %2203 = vmatpush3.bf16.msra.mxu1 %v2202_v18  ;;  %v2211_v26 = vpack.c.bf16 %v240_v25, %v239_v23  ;;  %v242_v28 = vld [vmem:[#allocation5 + $0x58] sm:$0xff]  ;;  %v1864_v39 = vld [vmem:[#allocation5 + $0x251] ss:$0 sm:$0xff]  ;;  %v1865_v41 = vld [vmem:[#allocation5 + $0x252] ss:$0 sm:$0xff]  ;;  %s2426_s9 = smov 24  }
  0x2c   :  { %2204 = vmatprep.subr.bf16.mxu1 %v2419_v0  ;;  %v2214_v29 = vpack.c.bf16 %v242_v28, %v241_v27  ;;  %v243_v44 = vld [vmem:[#allocation5 + $0x60] sm:$0xff]  ;;  %v244_v45 = vld [vmem:[#allocation5 + $0x68] sm:$0xff]  ;;  %v1866_v47 = vld [vmem:[#allocation5 + $0x253] ss:$0 sm:$0xff]  ;;  %s2427_s10 = smov 40   ;;  %s2428_s11 = smov [#allocation7]  }
  0x2d   :  { %2010 = vmatmul.mubr.msk.f32.vlgmr.msra.gmra.mrb[0].mxu0 %vm46_vm1, %v38_v5  ;;  %v2217_v46 = vpack.c.bf16 %v244_v45, %v243_v44  ;;  %v1868_v52 = vld [vmem:[#allocation5 + $0x254] ss:$0 sm:$0xff]  ;;  %v353_v61 = vld [vmem:[#allocation5 + $0x78] sm:$0xff]  ;;  %v354_v63 = vld [vmem:[#allocation5 + $0x80] sm:$0xff]  ;;  %s1852_s12 = sshll.u32 %s2428_s11, 4  ;;  %s1853_s12 = int_to_ptr.vmem [resolvable:$true] %s1852_s12 }
  0x2e   :  { %2039 = vmatprep.mubr.msk.f32.mxu0 %vm2420_vm0, %v2421_v1  ;;  %2209 = vmatpush3.bf16.msra.mxu0 %v2208_v24  ;;  %v352_v60 = vld [vmem:[#allocation5 + $0x70] sm:$0xff]  ;;  %v355_v2 = vld [vmem:[#allocation5 + $0x88] sm:$0xff]  ;;  %v463_v27 = vld [vmem:[#allocation5 + $0x98] sm:$0xff]  ;;  %s2387_s13 = scalar_lea.vmem %s1853_s12, 128  ;;  %p2392_p3 = scmp.lt.s32.totalorder %s1853_s12, %s1853_s12 }
  0x2f   :  { %2206 = vmatpush3.bf16.msra.mxu1 %v2205_v20  ;;  %2210 = vmatprep.subr.bf16.mxu0 %v2419_v0  ;;  %v2220_v62 = vpack.c.bf16 %v353_v61, %v352_v60  ;;  %v2223_v3 = vpack.c.bf16 %v355_v2, %v354_v63  ;;  %v1871_v15 = vld [vmem:[#allocation5 + $0x256] ss:$0 sm:$0xff]  ;;  %v1872_v18 = vld [vmem:[#allocation5 + $0x257] ss:$0 sm:$0xff]  ;;  %v1878_v63 = vld [vmem:[#allocation5 + $0x25b] ss:$0 sm:$0xff]  ;;  %p2388_p2 = scmp.ne.s32.totalorder %s1853_s12, %s2387_s13  ;;  %p2393_p4 = scmp.lt.s32.totalorder %s2387_s13, %s2387_s13 }
  0x30   :  { %2219 = vmatprep.subr.bf16.mxu1 %v2419_v0 }
  0x31   :  { %p2394_p5 = por %p2393_p4, %p2392_p3 }
  0x32   :  { %2212 = vmatpush3.bf16.msra.mxu0 %v2211_v26  ;;  %v462_v26 = vld [vmem:[#allocation5 + $0x90] sm:$0xff] }
  0x33   :  { %2213 = vmatprep.subr.bf16.mxu0 %v2419_v0  ;;  %v2226_v28 = vpack.c.bf16 %v463_v27, %v462_v26  ;;  %v1881_v26 = vld [vmem:[#allocation5 + $0x25d] ss:$0 sm:$0xff]  ;;  %p2395_p6 = pnand %p2394_p5, %p2388_p2 }
  0x36   :  { %2215 = vmatpush3.bf16.msra.mxu0 %v2214_v29  ;;  %v464_v29 = vld [vmem:[#allocation5 + $0xa0] sm:$0xff] }
  0x37   :  { %2216 = vmatprep.subr.bf16.mxu0 %v2419_v0 }
  0x3a   :  { %2218 = vmatpush3.bf16.msra.mxu0 %v2217_v46 }
  0x3b   :  { %2231 = vmatprep.subr.bf16.mxu0 %v2419_v0 }
 0x100   :  { %v116_v7 = vpop.f32.mrb[0].mxu0 }
 0x101   :  { %v117_v8 = vadd.f32 %v1862_v6, %v116_v7  ;;  %v2011_v9 = vpop.f32.mrb[1].mxu0 }
 0x103   :  { %121 = vrot.lane.b32.xlu0 %v117_v8, %s2422_s1 }
 0x175   :  { %v122_v10 = vpop.permute.xlu0 %121 }
 0x176   :  { %v124_v11 = vadd.f32 %v122_v10, %v117_v8 }
 0x178   :  { %v126_v12 = vsel %vm125_vm2, %v124_v11, 0.0  ;;  %v131_v13 = vmul.f32 %v124_v11, %v124_v11 }
 0x179   :  { %127 = vadd.xlane.f32.xlu0 %v126_v12 }
 0x17a   :  { %v132_v14 = vsel %vm125_vm2, %v131_v13, 0.0  ;;  %v1870_v13 = vld [vmem:[#allocation5 + $0x255] ss:$0 sm:$0xff] }
 0x17b   :  { %133 = vadd.xlane.f32.xlu1 %v132_v14 }
 0x206   :  { %v128_v30 = vpop.xlane.xlu0 %127 }
 0x207   :  { %v130_v31 = vmul.f32 0.03125, %v128_v30  ;;  %v465_v30 = vld [vmem:[#allocation5 + $0xa8] sm:$0xff] }
 0x208   :  { %v134_v32 = vpop.xlane.xlu1 %133 }
 0x209   :  { %v136_v33 = vmul.f32 %v130_v31, %v130_v31  ;;  %v135_v34 = vmul.f32 0.03125, %v134_v32  ;;  %v138_v37 = vsub.f32 %v124_v11, %v130_v31  ;;  %v2229_v31 = vpack.c.bf16 %v465_v30, %v464_v29  ;;  %v545_v32 = vld [vmem:[#allocation5 + $0xb0] sm:$0xff]  ;;  %v743_v30 = vld [vmem:[#allocation5 + $0x218] sm:$0xff] }
 0x20a   :  { %v742_v29 = vld [vmem:[#allocation5 + $0x210] sm:$0xff] }
 0x20b   :  { %v137_v35 = vsub.f32 %v135_v34, %v136_v33  ;;  %v546_v33 = vld [vmem:[#allocation5 + $0xb8] sm:$0xff]  ;;  %v547_v34 = vld [vmem:[#allocation5 + $0xc0] sm:$0xff] }
 0x20d   :  { %v139_v36 = vadd.f32 1e-05, %v137_v35  ;;  %v2232_v35 = vpack.c.bf16 %v546_v33, %v545_v32  ;;  %v2250_v32 = vpack.c.bf16 %v743_v30, %v742_v29  ;;  %v827_v33 = vld [vmem:[#allocation5 + $0x118] sm:$0xff]  ;;  %v1004_v29 = vld [vmem:[#allocation5 + $0x148] sm:$0xff] }
 0x20f   :  { %2323 = vrsqrt.f32 %v139_v36  ;;  %v548_v36 = vld [vmem:[#allocation5 + $0xc8] sm:$0xff] }
 0x219   :  { %v2324_v38 = vpop.eup %2323 }
 0x21a   :  { %v141_v40 = vmul.f32 %v2324_v38, %v138_v37  ;;  %v2235_v37 = vpack.c.bf16 %v548_v36, %v547_v34  ;;  %v549_v38 = vld [vmem:[#allocation5 + $0xd0] sm:$0xff]  ;;  %v744_v34 = vld [vmem:[#allocation5 + $0x220] sm:$0xff] }
 0x21c   :  { %v147_v42 = vmul.f32 %v1864_v39, %v141_v40  ;;  %v550_v39 = vld [vmem:[#allocation5 + $0xd8] sm:$0xff] }
 0x21d   :  { %v2238_v40 = vpack.c.bf16 %v550_v39, %v549_v38  ;;  %v829_v38 = vld [vmem:[#allocation5 + $0x128] sm:$0xff] }
 0x21e   :  { %v153_v43 = vadd.f32 %v1865_v41, %v147_v42 }
 0x220   :  { %2021 = vmatmul.mubr.msk.f32.vlgmr.msra.gmra.mrb[0].mxu1 %vm125_vm2, %v153_v43 }
 0x221   :  { %2050 = vmatprep.mubr.msk.f32.mxu1 %vm2420_vm0, %v2421_v1  ;;  %2221 = vmatpush3.bf16.msra.mxu1 %v2220_v62 }
 0x222   :  { %2222 = vmatprep.subr.bf16.mxu1 %v2419_v0 }
 0x225   :  { %2224 = vmatpush3.bf16.msra.mxu1 %v2223_v3 }
 0x226   :  { %2225 = vmatprep.subr.bf16.mxu1 %v2419_v0 }
 0x2f3   :  { %v232_v48 = vpop.f32.mrb[0].mxu1 }
 0x2f4   :  { %v233_v49 = vadd.f32 %v1866_v47, %v232_v48  ;;  %v2022_v50 = vpop.f32.mrb[1].mxu1 }
 0x2f5   :  { %v1874_v50 = vld [vmem:[#allocation5 + $0x258] ss:$0 sm:$0xff] }
 0x2f6   :  { %v236_v51 = vmax.f32 %v233_v49, 0.0 }
 0x2f8   :  { %2040 = vmatmul.mubr.msk.f32.vlgmr.msra.gmra.mrb[2].mxu0 %vm250_vm3, %v236_v51 }
 0x2f9   :  { %2080 = vmatprep.mubr.msk.f32.mxu0 %vm2420_vm0, %v2421_v1  ;;  %2233 = vmatpush3.bf16.msra.mxu0 %v2232_v35  ;;  %v745_v35 = vld [vmem:[#allocation5 + $0x228] sm:$0xff] }
 0x2fa   :  { %2234 = vmatprep.subr.bf16.mxu0 %v2419_v0  ;;  %v2253_v39 = vpack.c.bf16 %v745_v35, %v744_v34 }
 0x2fd   :  { %2236 = vmatpush3.bf16.msra.mxu0 %v2235_v37  ;;  %v828_v37 = vld [vmem:[#allocation5 + $0x120] sm:$0xff] }
 0x2fe   :  { %2237 = vmatprep.subr.bf16.mxu0 %v2419_v0 }
 0x301   :  { %2239 = vmatpush3.bf16.msra.mxu0 %v2238_v40  ;;  %v2259_v40 = vpack.c.bf16 %v829_v38, %v828_v37  ;;  %v1086_v38 = vld [vmem:[#allocation5 + $0x150] sm:$0xff] }
 0x302   :  { %2240 = vmatprep.subr.bf16.mxu0 %v2419_v0 }
 0x3cb   :  { %v320_v53 = vpop.f32.mrb[2].mxu0 }
 0x3cc   :  { %v321_v54 = vadd.f32 %v1868_v52, %v320_v53  ;;  %v2041_v55 = vpop.f32.mrb[3].mxu0  ;;  %v1875_v52 = vld [vmem:[#allocation5 + $0x259] ss:$0 sm:$0xff] }
 0x3cd   :  { %v551_v55 = vld [vmem:[#allocation5 + $0xe0] sm:$0xff] }
 0x3ce   :  { %v324_v56 = vadd.f32 %v321_v54, %v153_v43 }
 0x3d0   :  { %v325_v57 = vsel %vm125_vm2, %v324_v56, 0.0  ;;  %v329_v58 = vmul.f32 %v324_v56, %v324_v56 }
 0x3d1   :  { %326 = vadd.xlane.f32.xlu1 %v325_v57 }
 0x3d2   :  { %v330_v59 = vsel %vm125_vm2, %v329_v58, 0.0  ;;  %v1876_v58 = vld [vmem:[#allocation5 + $0x25a] ss:$0 sm:$0xff] }
 0x3d5   :  { %331 = vadd.xlane.f32.xlu1 %v330_v59 }
 0x45e   :  { %v327_v4 = vpop.xlane.xlu1 %326 }
 0x45f   :  { %v328_v5 = vmul.f32 0.03125, %v327_v4 }
 0x461   :  { %v334_v7 = vmul.f32 %v328_v5, %v328_v5  ;;  %v336_v11 = vsub.f32 %v324_v56, %v328_v5  ;;  %v552_v56 = vld [vmem:[#allocation5 + $0xe8] sm:$0xff] }
 0x462   :  { %v332_v6 = vpop.xlane.xlu1 %331  ;;  %v2241_v57 = vpack.c.bf16 %v552_v56, %v551_v55 }
 0x463   :  { %v333_v8 = vmul.f32 0.03125, %v332_v6 }
 0x464   :  { %2242 = vmatpush3.bf16.msra.mxu0 %v2241_v57 }
 0x465   :  { %v335_v9 = vsub.f32 %v333_v8, %v334_v7  ;;  %2255 = vmatprep.subr.bf16.mxu0 %v2419_v0 }
 0x467   :  { %v337_v10 = vadd.f32 1e-05, %v335_v9  ;;  %v659_v9 = vld [vmem:[#allocation5 + $0xf0] sm:$0xff] }
 0x469   :  { %2325 = vrsqrt.f32 %v337_v10  ;;  %v660_v10 = vld [vmem:[#allocation5 + $0xf8] sm:$0xff] }
 0x473   :  { %v2326_v12 = vpop.eup %2325 }
 0x474   :  { %v339_v14 = vmul.f32 %v2326_v12, %v336_v11  ;;  %v2244_v11 = vpack.c.bf16 %v660_v10, %v659_v9  ;;  %v661_v12 = vld [vmem:[#allocation5 + $0x100] sm:$0xff] }
 0x476   :  { %v345_v16 = vmul.f32 %v1870_v13, %v339_v14  ;;  %v662_v13 = vld [vmem:[#allocation5 + $0x108] sm:$0xff] }
 0x477   :  { %v2247_v14 = vpack.c.bf16 %v662_v13, %v661_v12 }
 0x478   :  { %v351_v17 = vadd.f32 %v1871_v15, %v345_v16 }
 0x47a   :  { %2051 = vmatmul.mubr.msk.f32.vlgmr.msra.gmra.mrb[2].mxu1 %vm125_vm2, %v351_v17 }
 0x47b   :  { %2061 = vmatprep.mubr.msk.f32.mxu1 %vm2420_vm0, %v2421_v1  ;;  %2227 = vmatpush3.bf16.msra.mxu1 %v2226_v28 }
 0x47c   :  { %2228 = vmatprep.subr.bf16.mxu1 %v2419_v0 }
 0x47f   :  { %2230 = vmatpush3.bf16.msra.mxu1 %v2229_v31  ;;  %v826_v31 = vld [vmem:[#allocation5 + $0x110] sm:$0xff] }
 0x480   :  { %2243 = vmatprep.subr.bf16.mxu1 %v2419_v0  ;;  %v2256_v36 = vpack.c.bf16 %v827_v33, %v826_v31 }
 0x54d   :  { %v430_v19 = vpop.f32.mrb[2].mxu1 }
 0x54e   :  { %v431_v20 = vadd.f32 %v1872_v18, %v430_v19  ;;  %v2052_v21 = vpop.f32.mrb[3].mxu1 }
 0x550   :  { %v434_v22 = vadd.f32 %v431_v20, %v351_v17 }
 0x552   :  { %v435_v23 = vsel %vm125_vm2, %v434_v22, 0.0  ;;  %v439_v24 = vmul.f32 %v434_v22, %v434_v22 }
 0x553   :  { %436 = vadd.xlane.f32.xlu1 %v435_v23 }
 0x554   :  { %v440_v25 = vsel %vm125_vm2, %v439_v24, 0.0  ;;  %v1880_v24 = vld [vmem:[#allocation5 + $0x25c] ss:$0 sm:$0xff] }
 0x557   :  { %441 = vadd.xlane.f32.xlu1 %v440_v25 }
 0x5e0   :  { %v437_v41 = vpop.xlane.xlu1 %436 }
 0x5e1   :  { %v438_v42 = vmul.f32 0.03125, %v437_v41  ;;  %v1882_v41 = vld [vmem:[#allocation5 + $0x25e] ss:$0 sm:$0xff] }
 0x5e3   :  { %v444_v44 = vmul.f32 %v438_v42, %v438_v42  ;;  %v446_v48 = vsub.f32 %v434_v22, %v438_v42 }
 0x5e4   :  { %v442_v43 = vpop.xlane.xlu1 %441 }
 0x5e5   :  { %v443_v45 = vmul.f32 0.03125, %v442_v43 }
 0x5e7   :  { %v445_v46 = vsub.f32 %v443_v45, %v444_v44 }
 0x5e9   :  { %v447_v47 = vadd.f32 1e-05, %v445_v46 }
 0x5eb   :  { %2327 = vrsqrt.f32 %v447_v47  ;;  %v1886_v47 = vld [vmem:[#allocation5 + $0x25f] ss:$0 sm:$0xff] }
 0x5f5   :  { %v2328_v49 = vpop.eup %2327 }
 0x5f6   :  { %v449_v51 = vmul.f32 %v2328_v49, %v446_v48 }
 0x5f8   :  { %v455_v53 = vmul.f32 %v1874_v50, %v449_v51 }
 0x5fa   :  { %v461_v54 = vadd.f32 %v1875_v52, %v455_v53 }
 0x5fc   :  { %2062 = vmatmul.mubr.msk.f32.vlgmr.msra.gmra.mrb[4].mxu1 %vm125_vm2, %v461_v54 }
 0x5fd   :  { %2091 = vmatprep.mubr.msk.f32.mxu1 %vm2420_vm0, %v2421_v1  ;;  %2245 = vmatpush3.bf16.msra.mxu1 %v2244_v11 }
 0x5fe   :  { %2246 = vmatprep.subr.bf16.mxu1 %v2419_v0 }
 0x601   :  { %2248 = vmatpush3.bf16.msra.mxu1 %v2247_v14 }
 0x602   :  { %2249 = vmatprep.subr.bf16.mxu1 %v2419_v0 }
 0x6cf   :  { %v540_v59 = vpop.f32.mrb[4].mxu1 }
 0x6d0   :  { %v541_v60 = vadd.f32 %v1876_v58, %v540_v59  ;;  %v2063_v61 = vpop.f32.mrb[5].mxu1 }
 0x6d1   :  { %v1884_v61 = vld [vmem:[#allocation5 + $0x271] ss:$0 sm:$0xff] }
 0x6d2   :  { %v544_v62 = vmax.f32 %v541_v60, 0.0  ;;  %v1889_v60 = vld [vmem:[#allocation5 + $0x261] ss:$0 sm:$0xff] }
 0x6d4   :  { %2081 = vmatmul.mubr.msk.f32.vlgmr.msra.gmra.mrb[4].mxu0 %vm250_vm3, %v544_v62 }
 0x6d5   :  { %2113 = vmatprep.mubr.msk.f32.mxu0 %vm2420_vm0, %v2421_v1  ;;  %2257 = vmatpush3.bf16.msra.mxu0 %v2256_v36 }
 0x6d6   :  { %2258 = vmatprep.subr.bf16.mxu0 %v2419_v0 }
 0x6d9   :  { %2260 = vmatpush3.bf16.msra.mxu0 %v2259_v40  ;;  %v1088_v40 = vld [vmem:[#allocation5 + $0x160] sm:$0xff] }
 0x6da   :  { %2267 = vmatprep.subr.bf16.mxu0 %v2419_v0 }
 0x7a7   :  { %v627_v2 = vpop.f32.mrb[4].mxu0 }
 0x7a8   :  { %v628_v3 = vadd.f32 %v1878_v63, %v627_v2  ;;  %v2082_v4 = vpop.f32.mrb[5].mxu0  ;;  %v1888_v63 = vld [vmem:[#allocation5 + $0x260] ss:$0 sm:$0xff] }
 0x7aa   :  { %v631_v5 = vadd.f32 %v628_v3, %v461_v54 }
 0x7ac   :  { %v632_v6 = vsel %vm125_vm2, %v631_v5, 0.0  ;;  %v636_v7 = vmul.f32 %v631_v5, %v631_v5 }
 0x7ad   :  { %633 = vadd.xlane.f32.xlu1 %v632_v6 }
 0x7ae   :  { %v637_v8 = vsel %vm125_vm2, %v636_v7, 0.0 }
 0x7b1   :  { %638 = vadd.xlane.f32.xlu1 %v637_v8 }
 0x83a   :  { %v634_v15 = vpop.xlane.xlu1 %633 }
 0x83b   :  { %v635_v16 = vmul.f32 0.03125, %v634_v15 }
 0x83d   :  { %v641_v18 = vmul.f32 %v635_v16, %v635_v16  ;;  %v643_v22 = vsub.f32 %v631_v5, %v635_v16 }
 0x83e   :  { %v639_v17 = vpop.xlane.xlu1 %638 }
 0x83f   :  { %v640_v19 = vmul.f32 0.03125, %v639_v17 }
 0x841   :  { %v642_v20 = vsub.f32 %v640_v19, %v641_v18 }
 0x843   :  { %v644_v21 = vadd.f32 1e-05, %v642_v20 }
 0x845   :  { %2329 = vrsqrt.f32 %v644_v21 }
 0x84f   :  { %v2330_v23 = vpop.eup %2329 }
 0x850   :  { %v646_v25 = vmul.f32 %v2330_v23, %v643_v22  ;;  %v1891_v23 = vld [vmem:[#allocation5 + $0x263] ss:$0 sm:$0xff] }
 0x852   :  { %v652_v27 = vmul.f32 %v1880_v24, %v646_v25  ;;  %v1890_v24 = vld [vmem:[#allocation5 + $0x262] ss:$0 sm:$0xff]  ;;  %v1001_v25 = vld [vmem:[#allocation5 + $0x130] sm:$0xff] }
 0x854   :  { %v658_v28 = vadd.f32 %v1881_v26, %v652_v27  ;;  %v1002_v26 = vld [vmem:[#allocation5 + $0x138] sm:$0xff]  ;;  %v1003_v27 = vld [vmem:[#allocation5 + $0x140] sm:$0xff] }
 0x855   :  { %v2265_v30 = vpack.c.bf16 %v1004_v29, %v1003_v27 }
 0x856   :  { %2092 = vmatmul.mubr.msk.f32.vlgmr.msra.gmra.mrb[6].mxu1 %vm125_vm2, %v658_v28  ;;  %v2262_v28 = vpack.c.bf16 %v1002_v26, %v1001_v25 }
 0x857   :  { %2102 = vmatprep.mubr.msk.f32.mxu1 %vm2420_vm0, %v2421_v1  ;;  %2251 = vmatpush3.bf16.msra.mxu1 %v2250_v32 }
 0x858   :  { %2252 = vmatprep.subr.bf16.mxu1 %v2419_v0 }
 0x85b   :  { %2254 = vmatpush3.bf16.msra.mxu1 %v2253_v39  ;;  %v1087_v39 = vld [vmem:[#allocation5 + $0x158] sm:$0xff] }
 0x85c   :  { %2261 = vmatprep.subr.bf16.mxu1 %v2419_v0 }
 0x929   :  { %v737_v42 = vpop.f32.mrb[6].mxu1 }
 0x92a   :  { %v2533_v43 = vadd.f32 %v1882_v41, %v737_v42  ;;  %v2093_v44 = vpop.f32.mrb[7].mxu1  ;;  %v2268_v41 = vpack.c.bf16 %v1087_v39, %v1086_v38  ;;  %v1089_v42 = vld [vmem:[#allocation5 + $0x168] sm:$0xff] }
 0x92b   :  { %v2271_v44 = vpack.c.bf16 %v1089_v42, %v1088_v40 }
 0x92c   :  { %v741_v45 = vmax.f32 %v2533_v43, 0.0 }
 0x92e   :  { %752 = vrot.lane.b32.xlu1 %v741_v45, %s2422_s1 }
 0x9a0   :  { %v753_v46 = vpop.permute.xlu1 %752 }
 0x9a1   :  { %2103 = vmatmul.mubr.msk.f32.vlgmr.msra.gmra.mrb[8].mxu1 %vm125_vm2, %v753_v46  ;;  %2114 = vmatmul.mubr.msk.f32.vlgmr.msra.gmra.mrb[6].mxu0 %vm125_vm2, %v753_v46  ;;  %v1091_v46 = vld [vmem:[#allocation5 + $0x178] sm:$0xff] }
 0x9a2   :  { %2124 = vmatprep.mubr.msk.f32.mxu1 %vm2420_vm0, %v2421_v1  ;;  %2143 = vmatprep.mubr.msk.f32.mxu0 %vm2420_vm0, %v2421_v1 }
 0x9a3   :  { %2263 = vmatpush3.bf16.msra.mxu1 %v2262_v28  ;;  %2269 = vmatpush3.bf16.msra.mxu0 %v2268_v41 }
 0x9a4   :  { %2264 = vmatprep.subr.bf16.mxu1 %v2419_v0  ;;  %2270 = vmatprep.subr.bf16.mxu0 %v2419_v0 }
 0x9a7   :  { %2266 = vmatpush3.bf16.msra.mxu1 %v2265_v30  ;;  %2272 = vmatpush3.bf16.msra.mxu0 %v2271_v44 }
 0x9a8   :  { %2279 = vmatprep.subr.bf16.mxu1 %v2419_v0  ;;  %2273 = vmatprep.subr.bf16.mxu0 %v2419_v0 }
 0xa74   :  { %v822_v48 = vpop.f32.mrb[8].mxu1  ;;  %v901_v49 = vpop.f32.mrb[6].mxu0 }
 0xa75   :  { %v902_v50 = vadd.f32 %v1886_v47, %v901_v49  ;;  %v2104_v51 = vpop.f32.mrb[9].mxu1  ;;  %v2115_v52 = vpop.f32.mrb[7].mxu0  ;;  %v2549_v62 = vadd.f32 %v1884_v61, %v822_v48 }
 0xa77   :  { %906 = vrot.lane.b32.xlu0 %v902_v50, %s2423_s6 }
 0xae9   :  { %v907_v53 = vpop.permute.xlu0 %906 }
 0xaea   :  { %v909_v54 = vadd.f32 %v907_v53, %v741_v45  ;;  %v1090_v45 = vld [vmem:[#allocation5 + $0x170] sm:$0xff] }
 0xaeb   :  { %v2274_v51 = vpack.c.bf16 %v1091_v46, %v1090_v45 }
 0xaec   :  { %911 = vrot.lane.b32.xlu1 %v909_v54, %s2422_s1  ;;  %v918_v55 = vmul.f32 %v909_v54, %v909_v54 }
 0xaed   :  { %2275 = vmatpush3.bf16.msra.mxu0 %v2274_v51 }
 0xaee   :  { %2276 = vmatprep.subr.bf16.mxu0 %v2419_v0 }
 0xaf0   :  { %920 = vrot.lane.b32.xlu1 %v918_v55, %s2422_s1 }
 0xb5e   :  { %v912_v56 = vpop.permute.xlu1 %911 }
 0xb5f   :  { %v914_v57 = vsel %vm125_vm2, %v912_v56, 0.0  ;;  %v1092_v56 = vld [vmem:[#allocation5 + $0x180] sm:$0xff] }
 0xb60   :  { %915 = vadd.xlane.f32.xlu1 %v914_v57  ;;  %v1093_v57 = vld [vmem:[#allocation5 + $0x188] sm:$0xff] }
 0xb62   :  { %v921_v58 = vpop.permute.xlu1 %920 }
 0xb63   :  { %v923_v59 = vsel %vm125_vm2, %v921_v58, 0.0  ;;  %v2277_v58 = vpack.c.bf16 %v1093_v57, %v1092_v56 }
 0xb64   :  { %924 = vadd.xlane.f32.xlu0 %v923_v59  ;;  %v1892_v59 = vld [vmem:[#allocation5 + $0x264] ss:$0 sm:$0xff] }
 0xb65   :  { %2278 = vmatpush3.bf16.msra.mxu0 %v2277_v58 }
 0xb66   :  { %2291 = vmatprep.subr.bf16.mxu0 %v2419_v0 }
 0xb71   :  { %949 = vrot.lane.b32.xlu1 %v1889_v60, %s2423_s6 }
 0xb75   :  { %954 = vrot.lane.b32.xlu1 %v2549_v62, %s2423_s6 }
 0xb7a   :  { %939 = vrot.lane.b32.xlu0 %v1888_v63, %s2423_s6 }
 0xbed   :  { %v916_v2 = vpop.xlane.xlu1 %915 }
 0xbee   :  { %v917_v3 = vmul.f32 0.03125, %v916_v2 }
 0xbf0   :  { %v927_v5 = vmul.f32 %v917_v3, %v917_v3  ;;  %v929_v9 = vsub.f32 %v909_v54, %v917_v3  ;;  %v1894_v3 = vld [vmem:[#allocation5 + $0x265] ss:$0 sm:$0xff] }
 0xbf1   :  { %v925_v4 = vpop.xlane.xlu0 %924  ;;  %v950_v11 = vpop.permute.xlu1 %949 }
 0xbf2   :  { %v926_v6 = vmul.f32 0.03125, %v925_v4 }
 0xbf4   :  { %v928_v7 = vsub.f32 %v926_v6, %v927_v5 }
 0xbf5   :  { %v940_v12 = vpop.permute.xlu0 %939  ;;  %v955_v16 = vpop.permute.xlu1 %954 }
 0xbf6   :  { %v930_v8 = vadd.f32 1e-05, %v928_v7 }
 0xbf8   :  { %2331 = vrsqrt.f32 %v930_v8 }
 0xc02   :  { %v2332_v10 = vpop.eup %2331 }
 0xc03   :  { %v932_v13 = vmul.f32 %v2332_v10, %v929_v9 }
 0xc05   :  { %v942_v14 = vmul.f32 %v940_v12, %v932_v13 }
 0xc07   :  { %v952_v15 = vadd.f32 %v950_v11, %v942_v14  ;;  %v1897_v14 = vld [vmem:[#allocation5 + $0x267] ss:$0 sm:$0xff] }
 0xc09   :  { %v957_v17 = vadd.f32 %v955_v16, %v952_v15  ;;  %v1896_v15 = vld [vmem:[#allocation5 + $0x266] ss:$0 sm:$0xff]  ;;  %v1220_v16 = vld [vmem:[#allocation5 + $0x190] sm:$0xff] }
 0xc0b   :  { %959 = vrot.lane.b32.xlu0 %v957_v17, %s2422_s1  ;;  %v966_v18 = vmul.f32 %v957_v17, %v957_v17 }
 0xc0d   :  { %968 = vrot.lane.b32.xlu1 %v966_v18, %s2422_s1  ;;  %v1222_v18 = vld [vmem:[#allocation5 + $0x1a0] sm:$0xff] }
 0xc7d   :  { %v960_v19 = vpop.permute.xlu0 %959 }
 0xc7e   :  { %v962_v20 = vsel %vm125_vm2, %v960_v19, 0.0 }
 0xc7f   :  { %963 = vadd.xlane.f32.xlu0 %v962_v20  ;;  %v969_v21 = vpop.permute.xlu1 %968  ;;  %v1223_v20 = vld [vmem:[#allocation5 + $0x1a8] sm:$0xff] }
 0xc80   :  { %v971_v22 = vsel %vm125_vm2, %v969_v21, 0.0  ;;  %v2283_v21 = vpack.c.bf16 %v1223_v20, %v1222_v18 }
 0xc81   :  { %972 = vadd.xlane.f32.xlu1 %v971_v22 }
 0xc92   :  { %997 = vrot.lane.b32.xlu1 %v1891_v23, %s2423_s6 }
 0xc95   :  { %987 = vrot.lane.b32.xlu0 %v1890_v24, %s2423_s6 }
 0xd0c   :  { %v964_v31 = vpop.xlane.xlu0 %963 }
 0xd0d   :  { %v965_v32 = vmul.f32 0.03125, %v964_v31 }
 0xd0e   :  { %v973_v33 = vpop.xlane.xlu1 %972 }
 0xd0f   :  { %v975_v34 = vmul.f32 %v965_v32, %v965_v32  ;;  %v974_v35 = vmul.f32 0.03125, %v973_v33  ;;  %v977_v47 = vsub.f32 %v957_v17, %v965_v32  ;;  %v1221_v17 = vld [vmem:[#allocation5 + $0x198] sm:$0xff] }
 0xd10   :  { %v988_v49 = vpop.permute.xlu0 %987  ;;  %v2280_v19 = vpack.c.bf16 %v1221_v17, %v1220_v16 }
 0xd11   :  { %v976_v36 = vsub.f32 %v974_v35, %v975_v34 }
 0xd12   :  { %v998_v52 = vpop.permute.xlu1 %997 }
 0xd13   :  { %v978_v37 = vadd.f32 1e-05, %v976_v36 }
 0xd15   :  { %2333 = vrsqrt.f32 %v978_v37  ;;  %v1898_v37 = vld [vmem:[#allocation5 + $0x268] ss:$0 sm:$0xff] }
 0xd1f   :  { %v2334_v48 = vpop.eup %2333 }
 0xd20   :  { %v980_v50 = vmul.f32 %v2334_v48, %v977_v47 }
 0xd22   :  { %v990_v53 = vmul.f32 %v988_v49, %v980_v50  ;;  %v1901_v49 = vld [vmem:[#allocation5 + $0x26a] ss:$0 sm:$0xff]  ;;  %v1900_v50 = vld [vmem:[#allocation5 + $0x269] ss:$0 sm:$0xff] }
 0xd24   :  { %v1000_v54 = vadd.f32 %v998_v52, %v990_v53 }
 0xd26   :  { %1011 = vrot.lane.b32.xlu0 %v1000_v54, %s2422_s1 }
 0xd98   :  { %v1012_v55 = vpop.permute.xlu0 %1011 }
 0xd99   :  { %2125 = vmatmul.mubr.msk.f32.vlgmr.msra.gmra.mrb[10].mxu1 %vm125_vm2, %v1012_v55 }
 0xd9a   :  { %2154 = vmatprep.mubr.msk.f32.mxu1 %vm2420_vm0, %v2421_v1  ;;  %2281 = vmatpush3.bf16.msra.mxu1 %v2280_v19 }
 0xd9b   :  { %2282 = vmatprep.subr.bf16.mxu1 %v2419_v0 }
 0xd9e   :  { %2284 = vmatpush3.bf16.msra.mxu1 %v2283_v21 }
 0xd9f   :  { %2285 = vmatprep.subr.bf16.mxu1 %v2419_v0 }
 0xe6c   :  { %v1081_v60 = vpop.f32.mrb[10].mxu1 }
 0xe6d   :  { %v1082_v61 = vadd.f32 %v1892_v59, %v1081_v60  ;;  %v2126_v63 = vpop.f32.mrb[11].mxu1 }
 0xe6f   :  { %v1085_v2 = vmax.f32 %v1082_v61, 0.0 }
 0xe71   :  { %2144 = vmatmul.mubr.msk.f32.vlgmr.msra.gmra.mrb[8].mxu0 %vm250_vm3, %v1085_v2 }
 0xe72   :  { %2184 = vmatprep.mubr.msk.f32.mxu0 %vm2420_vm0, %v2421_v1 }
 0xf44   :  { %v1168_v4 = vpop.f32.mrb[8].mxu0 }
 0xf45   :  { %v1169_v5 = vadd.f32 %v1894_v3, %v1168_v4  ;;  %v2145_v6 = vpop.f32.mrb[9].mxu0 }
 0xf47   :  { %1173 = vrot.lane.b32.xlu1 %v1169_v5, %s2423_s6 }
 0xfb9   :  { %v1174_v7 = vpop.permute.xlu1 %1173 }
 0xfba   :  { %v1176_v8 = vadd.f32 %v1174_v7, %v1000_v54 }
 0xfbc   :  { %1178 = vrot.lane.b32.xlu0 %v1176_v8, %s2422_s1  ;;  %v1185_v9 = vmul.f32 %v1176_v8, %v1176_v8 }
 0xfbe   :  { %1187 = vrot.lane.b32.xlu1 %v1185_v9, %s2422_s1 }
0x102e   :  { %v1179_v10 = vpop.permute.xlu0 %1178 }
0x102f   :  { %v1181_v11 = vsel %vm125_vm2, %v1179_v10, 0.0  ;;  %v1903_v10 = vld [vmem:[#allocation5 + $0x26c] ss:$0 sm:$0xff] }
0x1030   :  { %1182 = vadd.xlane.f32.xlu0 %v1181_v11  ;;  %v1188_v12 = vpop.permute.xlu1 %1187  ;;  %v1902_v11 = vld [vmem:[#allocation5 + $0x26b] ss:$0 sm:$0xff] }
0x1031   :  { %v1190_v13 = vsel %vm125_vm2, %v1188_v12, 0.0  ;;  %v1397_v12 = vld [vmem:[#allocation5 + $0x1b8] sm:$0xff] }
0x1032   :  { %1191 = vadd.xlane.f32.xlu1 %v1190_v13  ;;  %v1398_v13 = vld [vmem:[#allocation5 + $0x1c0] sm:$0xff] }
0x1043   :  { %1216 = vrot.lane.b32.xlu1 %v1897_v14, %s2423_s6 }
0x1046   :  { %1206 = vrot.lane.b32.xlu0 %v1896_v15, %s2423_s6  ;;  %v1399_v15 = vld [vmem:[#allocation5 + $0x1c8] sm:$0xff] }
0x1047   :  { %v2289_v16 = vpack.c.bf16 %v1399_v15, %v1398_v13 }
0x10bd   :  { %v1183_v22 = vpop.xlane.xlu0 %1182 }
0x10be   :  { %v1184_v23 = vmul.f32 0.03125, %v1183_v22 }
0x10bf   :  { %v1192_v24 = vpop.xlane.xlu1 %1191 }
0x10c0   :  { %v1194_v25 = vmul.f32 %v1184_v23, %v1184_v23  ;;  %v1193_v26 = vmul.f32 0.03125, %v1192_v24  ;;  %v1196_v29 = vsub.f32 %v1176_v8, %v1184_v23  ;;  %v1481_v24 = vld [vmem:[#allocation5 + $0x1d0] sm:$0xff] }
0x10c1   :  { %v1207_v31 = vpop.permute.xlu0 %1206 }
0x10c2   :  { %v1195_v27 = vsub.f32 %v1193_v26, %v1194_v25  ;;  %v1482_v25 = vld [vmem:[#allocation5 + $0x1d8] sm:$0xff]  ;;  %v1483_v26 = vld [vmem:[#allocation5 + $0x1e0] sm:$0xff] }
0x10c3   :  { %v1217_v33 = vpop.permute.xlu1 %1216 }
0x10c4   :  { %v1197_v28 = vadd.f32 1e-05, %v1195_v27  ;;  %v2292_v27 = vpack.c.bf16 %v1482_v25, %v1481_v24  ;;  %v1776_v24 = vsel %vm1736_vm7, %v2533_v43, -inf  ;;  %v1810_v25 = vsel %vm1771_vm8, %v2533_v43, -inf }
0x10c6   :  { %2335 = vrsqrt.f32 %v1197_v28  ;;  %v1484_v28 = vld [vmem:[#allocation5 + $0x1e8] sm:$0xff]  ;;  %2293 = vmatpush3.bf16.msra.mxu0 %v2292_v27 }
0x10c7   :  { %2294 = vmatprep.subr.bf16.mxu0 %v2419_v0 }
0x10d0   :  { %v2336_v30 = vpop.eup %2335 }
0x10d1   :  { %v1199_v32 = vmul.f32 %v2336_v30, %v1196_v29  ;;  %v2295_v29 = vpack.c.bf16 %v1484_v28, %v1483_v26  ;;  %v1485_v30 = vld [vmem:[#allocation5 + $0x1f0] sm:$0xff] }
0x10d3   :  { %v1209_v34 = vmul.f32 %v1207_v31, %v1199_v32  ;;  %v1486_v31 = vld [vmem:[#allocation5 + $0x1f8] sm:$0xff]  ;;  %2296 = vmatpush3.bf16.msra.mxu0 %v2295_v29 }
0x10d4   :  { %2297 = vmatprep.subr.bf16.mxu0 %v2419_v0 }
0x10d5   :  { %v1219_v35 = vadd.f32 %v1217_v33, %v1209_v34 }
0x10d7   :  { %1230 = vrot.lane.b32.xlu0 %v1219_v35, %s2422_s1 }
0x1149   :  { %v1231_v36 = vpop.permute.xlu0 %1230 }
0x114a   :  { %2155 = vmatmul.mubr.msk.f32.vlgmr.msra.gmra.mrb[12].mxu1 %vm125_vm2, %v1231_v36  ;;  %v2298_v36 = vpack.c.bf16 %v1486_v31, %v1485_v30 }
0x114b   :  { %2165 = vmatprep.mubr.msk.f32.mxu1 %vm2420_vm0, %v2421_v1 }
0x114c   :  { %2299 = vmatpush3.bf16.msra.mxu0 %v2298_v36 }
0x114d   :  { %2300 = vmatprep.subr.bf16.mxu0 %v2419_v0 }
0x121d   :  { %v1300_v38 = vpop.f32.mrb[12].mxu1 }
0x121e   :  { %v1301_v39 = vadd.f32 %v1898_v37, %v1300_v38  ;;  %v2156_v40 = vpop.f32.mrb[13].mxu1 }
0x1220   :  { %1305 = vrot.lane.b32.xlu1 %v1301_v39, %s2423_s6 }
0x1292   :  { %v1306_v41 = vpop.permute.xlu1 %1305 }
0x1293   :  { %v1308_v42 = vadd.f32 %v1306_v41, %v1219_v35  ;;  %v1487_v41 = vld [vmem:[#allocation5 + $0x200] sm:$0xff] }
0x1295   :  { %1310 = vrot.lane.b32.xlu0 %v1308_v42, %s2422_s1  ;;  %v1317_v44 = vmul.f32 %v1308_v42, %v1308_v42 }
0x1297   :  { %1319 = vrot.lane.b32.xlu1 %v1317_v44, %s2422_s1 }
0x1307   :  { %v1311_v45 = vpop.permute.xlu0 %1310 }
0x1308   :  { %v1313_v46 = vsel %vm125_vm2, %v1311_v45, 0.0  ;;  %v1904_v45 = vld [vmem:[#allocation5 + $0x26d] ss:$0 sm:$0xff] }
0x1309   :  { %1314 = vadd.xlane.f32.xlu0 %v1313_v46  ;;  %v1320_v47 = vpop.permute.xlu1 %1319 }
0x130a   :  { %v1322_v48 = vsel %vm125_vm2, %v1320_v47, 0.0 }
0x130b   :  { %1323 = vadd.xlane.f32.xlu1 %v1322_v48 }
0x131c   :  { %1348 = vrot.lane.b32.xlu1 %v1901_v49, %s2423_s6 }
0x131f   :  { %1338 = vrot.lane.b32.xlu0 %v1900_v50, %s2423_s6  ;;  %v1906_v50 = vld [vmem:[#allocation5 + $0x26e] ss:$0 sm:$0xff] }
0x1396   :  { %v1315_v51 = vpop.xlane.xlu0 %1314 }
0x1397   :  { %v1316_v52 = vmul.f32 0.03125, %v1315_v51 }
0x1398   :  { %v1324_v53 = vpop.xlane.xlu1 %1323 }
0x1399   :  { %v1326_v54 = vmul.f32 %v1316_v52, %v1316_v52  ;;  %v1325_v55 = vmul.f32 0.03125, %v1324_v53  ;;  %v1328_v58 = vsub.f32 %v1308_v42, %v1316_v52  ;;  %v1488_v42 = vld [vmem:[#allocation5 + $0x208] sm:$0xff] }
0x139a   :  { %v1339_v60 = vpop.permute.xlu0 %1338  ;;  %v2301_v44 = vpack.c.bf16 %v1488_v42, %v1487_v41 }
0x139b   :  { %v1327_v56 = vsub.f32 %v1325_v55, %v1326_v54 }
0x139c   :  { %v1349_v63 = vpop.permute.xlu1 %1348  ;;  %2302 = vmatpush3.bf16.msra.mxu0 %v2301_v44 }
0x139d   :  { %v1329_v57 = vadd.f32 1e-05, %v1327_v56 }
0x139f   :  { %2337 = vrsqrt.f32 %v1329_v57  ;;  %v1909_v57 = vld [vmem:[#allocation5 + $0x270] ss:$0 sm:$0xff] }
0x13a9   :  { %v2338_v59 = vpop.eup %2337 }
0x13aa   :  { %v1331_v61 = vmul.f32 %v2338_v59, %v1328_v58 }
0x13ac   :  { %v1341_v2 = vmul.f32 %v1339_v60, %v1331_v61 }
0x13ae   :  { %v1351_v3 = vadd.f32 %v1349_v63, %v1341_v2  ;;  %v1908_v63 = vld [vmem:[#allocation5 + $0x26f] ss:$0 sm:$0xff]  ;;  %v1709_v2 = vsel %vm1708_vm4, %v2533_v43, -inf }
0x13b0   :  { %v1352_v4 = vadd.f32 %v1351_v3, %v2549_v62  ;;  %v1396_v62 = vld [vmem:[#allocation5 + $0x1b0] sm:$0xff] }
0x13b1   :  { %v2286_v14 = vpack.c.bf16 %v1397_v12, %v1396_v62 }
0x13b2   :  { %1354 = vrot.lane.b32.xlu0 %v1352_v4, %s2422_s1  ;;  %v1361_v5 = vmul.f32 %v1352_v4, %v1352_v4 }
0x13b3   :  { %2287 = vmatpush3.bf16.msra.mxu1 %v2286_v14 }
0x13b4   :  { %1363 = vrot.lane.b32.xlu1 %v1361_v5, %s2422_s1  ;;  %2288 = vmatprep.subr.bf16.mxu1 %v2419_v0 }
0x13b7   :  { %2290 = vmatpush3.bf16.msra.mxu1 %v2289_v16  ;;  %v1706_v16 = vlaneseq }
0x13b8   :  { %2303 = vmatprep.subr.bf16.mxu1 %v2419_v0 }
0x1424   :  { %v1355_v6 = vpop.permute.xlu0 %1354 }
0x1425   :  { %v1357_v7 = vsel %vm125_vm2, %v1355_v6, 0.0 }
0x1426   :  { %1358 = vadd.xlane.f32.xlu0 %v1357_v7  ;;  %v1364_v8 = vpop.permute.xlu1 %1363 }
0x1427   :  { %v1366_v9 = vsel %vm125_vm2, %v1364_v8, 0.0 }
0x1428   :  { %1367 = vadd.xlane.f32.xlu1 %v1366_v9 }
0x1439   :  { %1392 = vrot.lane.b32.xlu1 %v1903_v10, %s2423_s6 }
0x143c   :  { %1382 = vrot.lane.b32.xlu0 %v1902_v11, %s2423_s6 }
0x14b3   :  { %v1359_v17 = vpop.xlane.xlu0 %1358 }
0x14b4   :  { %v1360_v18 = vmul.f32 0.03125, %v1359_v17  ;;  %v2620_v17 = vand.u32 127, %v1706_v16 }
0x14b5   :  { %v1368_v19 = vpop.xlane.xlu1 %1367 }
0x14b6   :  { %v1370_v20 = vmul.f32 %v1360_v18, %v1360_v18  ;;  %v1369_v21 = vmul.f32 0.03125, %v1368_v19  ;;  %v1372_v32 = vsub.f32 %v1352_v4, %v1360_v18 }
0x14b7   :  { %v1383_v34 = vpop.permute.xlu0 %1382 }
0x14b8   :  { %v1371_v22 = vsub.f32 %v1369_v21, %v1370_v20 }
0x14b9   :  { %v1393_v37 = vpop.permute.xlu1 %1392 }
0x14ba   :  { %v1373_v23 = vadd.f32 1e-05, %v1371_v22 }
0x14bc   :  { %2339 = vrsqrt.f32 %v1373_v23  ;;  %v1742_v23 = vsel %vm1741_vm6, %v2533_v43, -inf }
0x14c6   :  { %v2340_v33 = vpop.eup %2339 }
0x14c7   :  { %v1375_v35 = vmul.f32 %v2340_v33, %v1372_v32  ;;  %v1615_v32 = vld [vmem:[#allocation5 + $0x230] sm:$0xff]  ;;  %v1616_v33 = vld [vmem:[#allocation5 + $0x238] sm:$0xff] }
0x14c9   :  { %v1385_v38 = vmul.f32 %v1383_v34, %v1375_v35  ;;  %v2304_v34 = vpack.c.bf16 %v1616_v33, %v1615_v32 }
0x14cb   :  { %v1395_v39 = vadd.f32 %v1393_v37, %v1385_v38  ;;  %v1617_v38 = vld [vmem:[#allocation5 + $0x240] sm:$0xff] }
0x14cd   :  { %1406 = vrot.lane.b32.xlu0 %v1395_v39, %s2422_s1 }
0x153f   :  { %v1407_v40 = vpop.permute.xlu0 %1406 }
0x1540   :  { %2166 = vmatmul.mubr.msk.f32.vlgmr.msra.gmra.mrb[14].mxu1 %vm125_vm2, %v1407_v40 }
0x1541   :  { %2195 = vmatprep.mubr.msk.f32.mxu1 %vm2420_vm0, %v2421_v1  ;;  %2305 = vmatpush3.bf16.msra.mxu1 %v2304_v34 }
0x1542   :  { %2306 = vmatprep.subr.bf16.mxu1 %v2419_v0 }
0x1613   :  { %v1476_v46 = vpop.f32.mrb[14].mxu1 }
0x1614   :  { %v1477_v47 = vadd.f32 %v1904_v45, %v1476_v46  ;;  %v2167_v48 = vpop.f32.mrb[15].mxu1 }
0x1616   :  { %v1480_v49 = vmax.f32 %v1477_v47, 0.0 }
0x1618   :  { %2185 = vmatmul.mubr.msk.f32.vlgmr.msra.gmra.mrb[10].mxu0 %vm250_vm3, %v1480_v49  ;;  %vm1739_vm3 = vcmask 663168  }
0x16eb   :  { %v1563_v51 = vpop.f32.mrb[10].mxu0 }
0x16ec   :  { %v1564_v52 = vadd.f32 %v1906_v50, %v1563_v51  ;;  %v2186_v53 = vpop.f32.mrb[11].mxu0 }
0x16ee   :  { %1568 = vrot.lane.b32.xlu1 %v1564_v52, %s2423_s6 }
0x1760   :  { %v1569_v54 = vpop.permute.xlu1 %1568 }
0x1761   :  { %v1571_v55 = vadd.f32 %v1569_v54, %v1395_v39  ;;  %v1618_v39 = vld [vmem:[#allocation5 + $0x248] sm:$0xff] }
0x1762   :  { %v2307_v40 = vpack.c.bf16 %v1618_v39, %v1617_v38 }
0x1763   :  { %1573 = vrot.lane.b32.xlu0 %v1571_v55, %s2422_s1  ;;  %v1580_v56 = vmul.f32 %v1571_v55, %v1571_v55 }
0x1764   :  { %2308 = vmatpush3.bf16.msra.mxu1 %v2307_v40 }
0x1765   :  { %1582 = vrot.lane.b32.xlu1 %v1580_v56, %s2422_s1 }
0x1769   :  { %1611 = vrot.lane.b32.xlu1 %v1909_v57, %s2423_s6 }
0x17d5   :  { %v1574_v58 = vpop.permute.xlu0 %1573 }
0x17d6   :  { %v1576_v59 = vsel %vm125_vm2, %v1574_v58, 0.0 }
0x17d7   :  { %1577 = vadd.xlane.f32.xlu0 %v1576_v59  ;;  %v1583_v60 = vpop.permute.xlu1 %1582 }
0x17d8   :  { %v1585_v61 = vsel %vm125_vm2, %v1583_v60, 0.0 }
0x17d9   :  { %1586 = vadd.xlane.f32.xlu1 %v1585_v61 }
0x17db   :  { %v1612_v3 = vpop.permute.xlu1 %1611 }
0x17ea   :  { %1701 = vrot.lane.b32.xlu1 %v2533_v43, %s2424_s7 }
0x17ed   :  { %1601 = vrot.lane.b32.xlu0 %v1908_v63, %s2423_s6 }
0x180c   :  { %1710 = vmax.xlane.f32.xlu0 %v1709_v2 }
0x1864   :  { %v1578_v4 = vpop.xlane.xlu0 %1577 }
0x1865   :  { %v1579_v5 = vmul.f32 0.03125, %v1578_v4 }
0x1866   :  { %v1587_v6 = vpop.xlane.xlu1 %1586 }
0x1867   :  { %v1589_v7 = vmul.f32 %v1579_v5, %v1579_v5  ;;  %v1588_v8 = vmul.f32 0.03125, %v1587_v6  ;;  %v1591_v11 = vsub.f32 %v1571_v55, %v1579_v5 }
0x1868   :  { %v1602_v13 = vpop.permute.xlu0 %1601 }
0x1869   :  { %v1590_v9 = vsub.f32 %v1588_v8, %v1589_v7 }
0x186a   :  { %v2633_v26 = vpop.permute.xlu1 %1701 }
0x186b   :  { %v1592_v10 = vadd.f32 1e-05, %v1590_v9 }
0x186d   :  { %2341 = vrsqrt.f32 %v1592_v10 }
0x1877   :  { %v2342_v62 = vpop.eup %2341 }
0x1878   :  { %v1594_v12 = vmul.f32 %v2342_v62, %v1591_v11  ;;  %v1910_v62 = vld [vmem:[#allocation5 + $0x272] ss:$0 sm:$0xff] }
0x187a   :  { %v1604_v14 = vmul.f32 %v1602_v13, %v1594_v12 }
0x187c   :  { %v1614_v15 = vadd.f32 %v1612_v3, %v1604_v14 }
0x1899   :  { %v1711_v18 = vpop.xlane.xlu0 %1710 }
0x189a   :  { %vm1712_vm5 = vcmp.eq.f32.partialorder %v2533_v43, %v1711_v18 }
0x189b   :  { %v1713_v19 = vsel %vm1712_vm5, %v2620_v17, 8 }
0x189c   :  { %v1714_v20 = vsel %vm1708_vm4, %v1713_v19, 2147483647  ;;  %vm1774_vm4 = vcmask 671368  }
0x189d   :  { %v1716_v21 = vshra.s32 %v1714_v20, 16  ;;  %v1715_v27 = vand.u32 65535, %v1714_v20 }
0x189f   :  { %v1718_v22 = vcvt.s32.f32 %v1716_v21  ;;  %v1717_v29 = vcvt.s32.f32 %v1715_v27 }
0x18a1   :  { %1719 = vmin.xlane.f32.xlu1 %v1718_v22 }
0x18a5   :  { %1743 = vmax.xlane.f32.xlu1 %v1742_v23 }
0x18a9   :  { %1777 = vmax.xlane.f32.xlu1 %v1776_v24 }
0x18ad   :  { %1811 = vmax.xlane.f32.xlu1 %v1810_v25 }
0x18be   :  { %1746 = vrot.lane.b32.xlu1 %v2620_v17, %s2418_s3 }
0x192e   :  { %v1720_v28 = vpop.xlane.xlu1 %1719 }
0x192f   :  { %vm1721_vm9 = vcmp.eq.f32.partialorder %v1718_v22, %v1720_v28  ;;  %v1726_v31 = vcvt.f32.s32 %v1720_v28 }
0x1930   :  { %v1722_v30 = vsel %vm1721_vm9, %v1717_v29, inf  ;;  %vm1839_vm9 = vcmask 392512  }
0x1931   :  { %1723 = vmin.xlane.f32.xlu0 %v1722_v30  ;;  %v1727_v36 = vshll.u32 %v1726_v31, 16 }
0x1932   :  { %v1744_v0 = vpop.xlane.xlu1 %1743 }
0x1933   :  { %vm1745_vm11 = vcmp.eq.f32.partialorder %v2533_v43, %v1744_v0 }
0x1936   :  { %v1778_v44 = vpop.xlane.xlu1 %1777 }
0x1937   :  { %vm1779_vm12 = vcmp.eq.f32.partialorder %v2533_v43, %v1778_v44 }
0x193a   :  { %v1812_v45 = vpop.xlane.xlu1 %1811 }
0x193b   :  { %vm1813_vm13 = vcmp.eq.f32.partialorder %v2533_v43, %v1812_v45 }
0x193e   :  { %v1747_v46 = vpop.permute.xlu1 %1746 }
0x193f   :  { %v1748_v47 = vsel %vm1745_vm11, %v1747_v46, 8  ;;  %vm1844_vm11 = vcmask 1048224  }
0x1940   :  { %v1749_v48 = vsel %vm1741_vm6, %v1748_v47, 2147483647  ;;  %vm1805_vm6 = vcmask 326912  }
0x1941   :  { %v1751_v49 = vshra.s32 %v1749_v48, 16  ;;  %v1750_v57 = vand.u32 65535, %v1749_v48 }
0x1943   :  { %v1753_v50 = vcvt.s32.f32 %v1751_v49  ;;  %v1752_v60 = vcvt.s32.f32 %v1750_v57 }
0x19be   :  { %v1724_v35 = vpop.xlane.xlu0 %1723 }
0x19bf   :  { %v1725_v37 = vcvt.f32.s32 %v1724_v35 }
0x19c1   :  { %v2636_v41 = vadd.s32 %v1727_v36, %v1725_v37 }
0x19c3   :  { %vm1729_vm10 = vcmp.eq.s32.totalorder %v2620_v17, %v2636_v41 }
0x19c4   :  { %v1912_v42 = vsel %vm1729_vm10, 1.0, %v2421_v1  ;;  %vm1842_vm10 = vcmask 687768  }
0x19c5   :  { %1733 = vrot.lane.b32.xlu0 %v1912_v42, %s2425_s8 }
0x19c9   :  { %1780 = vrot.lane.b32.xlu0 %v2620_v17, %s2425_s8 }
0x19cd   :  { %1814 = vrot.lane.b32.xlu0 %v2620_v17, %s2426_s9 }
0x19d1   :  { %1625 = vrot.lane.b32.xlu0 %v1614_v15, %s2422_s1  ;;  %v1738_v15 = vcvt.s32.f32 %v2636_v41 }
0x19f0   :  { %1754 = vmin.xlane.f32.xlu0 %v1753_v50 }
0x1a37   :  { %v1734_v51 = vpop.permute.xlu0 %1733 }
0x1a3b   :  { %v1781_v52 = vpop.permute.xlu0 %1780 }
0x1a3c   :  { %v1782_v53 = vsel %vm1779_vm12, %v1781_v52, 8 }
0x1a3d   :  { %v1783_v58 = vsel %vm1736_vm7, %v1782_v53, 2147483647 }
0x1a3e   :  { %v1785_v61 = vshra.s32 %v1783_v58, 16  ;;  %v1784_v4 = vand.u32 65535, %v1783_v58 }
0x1a3f   :  { %v1815_v54 = vpop.permute.xlu0 %1814 }
0x1a40   :  { %v1816_v55 = vsel %vm1813_vm13, %v1815_v54, 8  ;;  %v1787_v2 = vcvt.s32.f32 %v1785_v61  ;;  %v1786_v9 = vcvt.s32.f32 %v1784_v4 }
0x1a41   :  { %v1817_v16 = vsel %vm1771_vm8, %v1816_v55, 2147483647 }
0x1a42   :  { %v1819_v18 = vshra.s32 %v1817_v16, 16  ;;  %v1818_v28 = vand.u32 65535, %v1817_v16 }
0x1a43   :  { %v1626_v56 = vpop.permute.xlu0 %1625 }
0x1a44   :  { %2196 = vmatmul.mubr.msk.f32.vlgmr.msra.gmra.mrb[16].mxu1 %vm125_vm2, %v1626_v56  ;;  %vm1704_vm2 = vcmask 654720   ;;  %v1821_v19 = vcvt.s32.f32 %v1819_v18  ;;  %v1820_v30 = vcvt.s32.f32 %v1818_v28 }
0x1a7d   :  { %v1755_v59 = vpop.xlane.xlu0 %1754 }
0x1a7e   :  { %vm1756_vm14 = vcmp.eq.f32.partialorder %v1753_v50, %v1755_v59  ;;  %v1761_v3 = vcvt.f32.s32 %v1755_v59 }
0x1a7f   :  { %v1757_v63 = vsel %vm1756_vm14, %v1752_v60, inf }
0x1a80   :  { %1758 = vmin.xlane.f32.xlu1 %v1757_v63  ;;  %v1762_v43 = vshll.u32 %v1761_v3, 16 }
0x1a84   :  { %1788 = vmin.xlane.f32.xlu1 %v1787_v2 }
0x1b0d   :  { %v1759_v5 = vpop.xlane.xlu1 %1758 }
0x1b0e   :  { %v1760_v6 = vcvt.f32.s32 %v1759_v5 }
0x1b10   :  { %v1763_v7 = vadd.s32 %v1762_v43, %v1760_v6 }
0x1b11   :  { %v1789_v8 = vpop.xlane.xlu1 %1788 }
0x1b12   :  { %vm1764_vm15 = vcmp.eq.s32.totalorder %v2620_v17, %v1763_v7  ;;  %vm1790_vm0 = vcmp.eq.f32.partialorder %v1787_v2, %v1789_v8  ;;  %v1773_v20 = vcvt.s32.f32 %v1763_v7  ;;  %v1795_v22 = vcvt.f32.s32 %v1789_v8 }
0x1b13   :  { %v1913_v10 = vsel %vm1764_vm15, 1.0, %v2421_v1  ;;  %v1791_v11 = vsel %vm1790_vm0, %v1786_v9, inf }
0x1b14   :  { %1768 = vrot.lane.b32.xlu0 %v1913_v10, %s2426_s9  ;;  %1792 = vmin.xlane.f32.xlu1 %v1791_v11  ;;  %v1796_v24 = vshll.u32 %v1795_v22, 16 }
0x1b17   :  { %v1695_v12 = vpop.f32.mrb[16].mxu1 }
0x1b18   :  { %v1696_v13 = vadd.f32 %v1910_v62, %v1695_v12  ;;  %v2197_v14 = vpop.f32.mrb[17].mxu1 }
0x1b1a   :  { %1699 = vst.msk [vmem:[#allocation7] sm:$0xff] %vm46_vm1, %v1696_v13 }
0x1b1b   :  { %1705 = vst.msk [vmem:[#allocation7] sm:$0xff] %vm1704_vm2, %v2633_v26 }
0x1b1c   :  { %1737 = vst.msk [vmem:[#allocation7] sm:$0xff] %vm1736_vm7, %v1734_v51  ;;  %vm1808_vm7 = vcmask 679568  }
0x1b1d   :  { %1740 = vst.msk [vmem:[#allocation7] sm:$0xff] %vm1739_vm3, %v1738_v15 }
0x1b33   :  { %1822 = vmin.xlane.f32.xlu0 %v1821_v19 }
0x1b86   :  { %v1769_v21 = vpop.permute.xlu0 %1768 }
0x1b87   :  { %1772 = vst.msk [vmem:[#allocation7] sm:$0xff] %vm1771_vm8, %v1769_v21 }
0x1b88   :  { %1775 = vst.msk [vmem:[#allocation7] sm:$0xff] %vm1774_vm4, %v1773_v20 }
0x1ba1   :  { %v1793_v23 = vpop.xlane.xlu1 %1792 }
0x1ba2   :  { %v1794_v25 = vcvt.f32.s32 %v1793_v23 }
0x1ba4   :  { %v1797_v27 = vadd.s32 %v1796_v24, %v1794_v25 }
0x1ba6   :  { %vm1798_vm1 = vcmp.eq.s32.totalorder %v2620_v17, %v1797_v27  ;;  %v1807_v32 = vcvt.s32.f32 %v1797_v27 }
0x1ba7   :  { %v1914_v26 = vsel %vm1798_vm1, 1.0, %v2421_v1 }
0x1ba8   :  { %1802 = vrot.lane.b32.xlu1 %v1914_v26, %s2423_s6 }
0x1bc0   :  { %v1823_v29 = vpop.xlane.xlu0 %1822 }
0x1bc1   :  { %vm1824_vm5 = vcmp.eq.f32.partialorder %v1821_v19, %v1823_v29  ;;  %v1829_v34 = vcvt.f32.s32 %v1823_v29 }
0x1bc2   :  { %v1825_v31 = vsel %vm1824_vm5, %v1820_v30, inf }
0x1bc3   :  { %v1830_v36 = vshll.u32 %v1829_v34, 16 }
0x1bcc   :  { %1826 = vmin.xlane.f32.xlu1 %v1825_v31 }
0x1c1a   :  { %v1803_v33 = vpop.permute.xlu1 %1802 }
0x1c1b   :  { %1806 = vst.msk [vmem:[#allocation7] sm:$0xff] %vm1805_vm6, %v1803_v33 }
0x1c1c   :  { %1809 = vst.msk [vmem:[#allocation7] sm:$0xff] %vm1808_vm7, %v1807_v32 }
0x1c59   :  { %v1827_v35 = vpop.xlane.xlu1 %1826 }
0x1c5a   :  { %v1828_v37 = vcvt.f32.s32 %v1827_v35 }
0x1c5c   :  { %v1831_v38 = vadd.s32 %v1830_v36, %v1828_v37 }
0x1c5e   :  { %vm1832_vm8 = vcmp.eq.s32.totalorder %v2620_v17, %v1831_v38  ;;  %v1841_v40 = vcvt.s32.f32 %v1831_v38 }
0x1c5f   :  { %v1915_v39 = vsel %vm1832_vm8, 1.0, %v2421_v1 }
0x1c60   :  { %1836 = vrot.lane.b32.xlu0 %v1915_v39, %s2427_s10 }
0x1cd2   :  { %v1837_v41 = vpop.permute.xlu0 %1836 }
0x1cd3   :  { %1840 = vst.msk [vmem:[#allocation7] sm:$0xff] %vm1839_vm9, %v1837_v41 }
0x1cd4   :  { %1843 = vst.msk [vmem:[#allocation7] sm:$0xff] %vm1842_vm10, %v1841_v40 }
0x1cd5   :  { %1845 = vst.msk [vmem:[#allocation7] sm:$0xff] %vm1844_vm11, %v2421_v1 }
0x1cd6   :  { %2398 = shalt.err (!%p2395_p6)
}
0x1cd7   :  { %s2399_s16 = scalar_lea.hbm %s2680_s2, 128 }
0x1cd8   :  { %p2400_p7 = scmp.ne.s32.totalorder %s2680_s2, %s2399_s16  ;;  %p2403_p8 = scmp.lt.u32.totalorder %s2399_s16, %s2680_s2 }
0x1cda   :  { %p2405_p9 = pnand %p2403_p8, %p2400_p7 }
0x1cdc   :  { %2408 = shalt.err (!%p2405_p9)
}
0x1cdd   :  { %1855 = dma.vmem_to_hbm [thread:$0]  %s1853_s12, 128, %s2680_s2, [#allocation4]  }
0x1cde   :  { %2413 = dma.done.wait [#allocation4], 128  }
0x1cdf   :  { %2414 = vsyncadd [#allocation4], 4294967168 }
0x1ce0   :  { %1859 = vsyncpa [#allocation3], 1 }
0x1ce1   :  { %1860 = vsyncpa [#allocation6], 1 }
0x1ce2   :  { %1861 = vsyncpa [#allocation4], 1 }

</bundles_post_ra>
